<compile_context>
chip_gen: v6e
topology: v6e:2x2x1
jax: 0.10.0
libtpu: 0.0.40
codegen_flags: <defaults>
</compile_context>

<pallas_src>
import jax
import jax.numpy as jnp
from jax import lax
from jax.experimental import pallas as pl
from jax.experimental.pallas import tpu as pltpu

HIDDEN = 128


def _softplus(x):
    # numerically stable softplus: max(x, 0) + log1p(exp(-|x|))
    # (matches torch.nn.functional.softplus for all finite x)
    return jnp.maximum(x, 0.0) + jnp.log1p(jnp.exp(-jnp.abs(x)))


def _cnp_kernel(cxy_ref, tx_ref, wsmall_ref, wbig_ref, whead_ref, b_ref,
                bhead_ref, out_ref):
    """One batch element per grid step; feature-major (H, rows) activations."""
    cdt = wbig_ref.dtype          # MXU operand dtype (f32, or bf16 on v6e/v7x)

    # ---------------- Encoder: (2, S) -> (H, S) ----------------
    cx = cxy_ref[0, 0:1, :]       # (1, S)
    cy = cxy_ref[0, 1:2, :]       # (1, S)
    # fc1 (in=2) as two rank-1 VPU broadcasts; a K=2 matmul would waste an MXU pass.
    h = wsmall_ref[:, 0:1] * cx + wsmall_ref[:, 1:2] * cy + b_ref[:, 0:1]
    h = jnp.maximum(h, 0.0)
    for i in range(3):            # encoder fc2..fc4: h <- relu(W @ h + b)
        h = jnp.dot(wbig_ref[i], h.astype(cdt), preferred_element_type=jnp.float32)
        h = jnp.maximum(h + b_ref[:, i + 1:i + 2], 0.0)

    # mean over the set axis (lane reduction) -> aggregated representation (H, 1)
    # TODO(synk): for very large S, tile S on a grid axis and accumulate the sum
    # in VMEM scratch (or fold the mean into an MXU matmul with a 1/S vector).
    rep = jnp.mean(h, axis=1, keepdims=True)

    # ---------------- Decoder: (H+1, T) -> (8, T) ----------------
    tx = tx_ref[0]                # (1, T)
    # fc1 on concat([rep, x], -1): the rep part is one (H, 1) column reused as a
    # per-batch bias for all T targets (no T-fold broadcast is materialized);
    # the x part is a rank-1 VPU broadcast.
    base = jnp.dot(wbig_ref[3], rep.astype(cdt),
                   preferred_element_type=jnp.float32) + b_ref[:, 4:5]
    g = jnp.maximum(base + wsmall_ref[:, 2:3] * tx, 0.0)          # (H, T)
    for i in (4, 5):              # decoder fc2, fc3
        g = jnp.dot(wbig_ref[i], g.astype(cdt), preferred_element_type=jnp.float32)
        g = jnp.maximum(g + b_ref[:, i + 1:i + 2], 0.0)

    # head: 128 -> 2, padded to 8 sublanes; row 0 = mu, row 1 = log_sigma.
    head = jnp.dot(whead_ref[...], g.astype(cdt),
                   preferred_element_type=jnp.float32) + bhead_ref[...]   # (8, T)

    # sigma = 0.1 + 0.9 * softplus(log_sigma), computed on the lane-dense (8, T)
    # packed slab (T lanes) rather than over 128 padded lanes.
    row = lax.broadcasted_iota(jnp.int32, head.shape, 0)
    sigma = 0.1 + 0.9 * _softplus(head)
    out_ref[0] = jnp.where(row == 1, sigma, head)   # rows 2..7 are zero padding


def init_params(key):
    H = HIDDEN
    ks = jax.random.split(key, 17)

    def u(k, shape, fan_in):
        bound = 1.0 / jnp.sqrt(fan_in)
        return jax.random.uniform(k, shape, jnp.float32, -bound, bound)

    return {
        # weights stored (in, out) so x @ W == PyTorch x @ weight.T
        "ew1": u(ks[0], (2, H), 2),      "eb1": u(ks[1], (H,), 2),
        "ew2": u(ks[2], (H, H), H),      "eb2": u(ks[3], (H,), H),
        "ew3": u(ks[4], (H, H), H),      "eb3": u(ks[5], (H,), H),
        "ew4": u(ks[6], (H, H), H),      "eb4": u(ks[7], (H,), H),
        # decoder fc1 weight (H+1, H) split into representation part and x part
        "dw1r": u(ks[8], (H, H), H + 1),
        "dw1x": u(ks[9], (1, H), H + 1),
        "db1": u(ks[10], (H,), H + 1),
        "dw2": u(ks[11], (H, H), H),     "db2": u(ks[12], (H,), H),
        "dw3": u(ks[13], (H, H), H),     "db3": u(ks[14], (H,), H),
        "dw4": u(ks[15], (H, 2), H),     "db4": u(ks[16], (2,), H),
    }


def _pack_params(params, weight_dtype=jnp.float32):
    """Consolidate 17 parameter arrays into 5 stacked, feature-major inputs."""
    H = HIDDEN
    # columns: encoder fc1 x-col, encoder fc1 y-col, decoder fc1 x-col
    w_small = jnp.stack([params["ew1"][0], params["ew1"][1], params["dw1x"][0]],
                        axis=1)                                              # (H, 3)
    # big weights in PyTorch-native (out, in) layout: y = W @ x
    w_big = jnp.stack([params["ew2"].T, params["ew3"].T, params["ew4"].T,
                       params["dw1r"].T, params["dw2"].T, params["dw3"].T])  # (6, H, H)
    w_head = jnp.zeros((8, H), jnp.float32).at[:2, :].set(params["dw4"].T)  # (8, H)
    biases = jnp.stack([params["eb1"], params["eb2"], params["eb3"], params["eb4"],
                        params["db1"], params["db2"], params["db3"]], axis=1)  # (H, 7)
    b_head = jnp.zeros((8, 1), jnp.float32).at[:2, 0].set(params["db4"])     # (8, 1)
    return (w_small.astype(weight_dtype), w_big.astype(weight_dtype),
            w_head.astype(weight_dtype), biases, b_head)   # biases stay f32


def cnp_forward(context_x, context_y, target_x, params, *,
                weight_dtype=jnp.float32):
    B, S, _ = context_x.shape
    _, T, _ = target_x.shape
    H = HIDDEN

    # lane-dense, feature-major inputs: (B, 2, S) and (B, 1, T)
    cxy_t = jnp.concatenate([context_x, context_y], axis=-1).transpose(0, 2, 1)
    tx_t = target_x.transpose(0, 2, 1)
    w_small, w_big, w_head, biases, b_head = _pack_params(params, weight_dtype)

    wbytes = sum(int(a.size) * a.dtype.itemsize
                 for a in (w_small, w_big, w_head, biases, b_head))
    flops = 2 * B * ((3 * S + 1 + 2 * T) * H * H + 8 * T * H) + 4 * B * (S + T) * H
    cost = pl.CostEstimate(
        flops=flops,
        transcendentals=8 * B * T,                       # softplus on the (8,T) slab
        bytes_accessed=(2 * B * S + B * T + 8 * B * T) * 4 + wbytes)

    const2 = lambda b: (0, 0)
    const3 = lambda b: (0, 0, 0)
    per_b = lambda b: (b, 0, 0)

    raw = pl.pallas_call(
        _cnp_kernel,
        out_shape=jax.ShapeDtypeStruct((B, 8, T), jnp.float32),
        grid=(B,),
        in_specs=[
            pl.BlockSpec((1, 2, S), per_b),    # context (x,y), one batch element
            pl.BlockSpec((1, 1, T), per_b),    # target x, one batch element
            pl.BlockSpec((H, 3), const2),      # thin fc1 columns (VMEM-resident)
            pl.BlockSpec((6, H, H), const3),   # stacked 128x128 weights (resident)
            pl.BlockSpec((8, H), const2),      # head weight, padded to 8 rows
            pl.BlockSpec((H, 7), const2),      # stacked biases
            pl.BlockSpec((8, 1), const2),      # head bias
        ],
        out_specs=pl.BlockSpec((1, 8, T), per_b),
        compiler_params=pltpu.CompilerParams(
            dimension_semantics=("parallel",),            # megacore on v7x
            vmem_limit_bytes=32 * 1024 * 1024),
        cost_estimate=cost,
    )(cxy_t, tx_t, w_small, w_big, w_head, biases, b_head)

    mu = raw[:, 0, :][..., None]       # (B, T, 1)
    sigma = raw[:, 1, :][..., None]    # (B, T, 1)
    # TODO(synk): torch.distributions.Normal(mu, sigma) has no Pallas equivalent;
    # (mu, sigma) fully parameterize it.
    return mu, sigma


def cnp_reference(context_x, context_y, target_x, params):
    """Pure-JAX reference mirroring the PyTorch module."""
    enc_in = jnp.concatenate([context_x, context_y], axis=-1)            # (B, S, 2)
    h = jax.nn.relu(enc_in @ params["ew1"] + params["eb1"])
    h = jax.nn.relu(h @ params["ew2"] + params["eb2"])
    h = jax.nn.relu(h @ params["ew3"] + params["eb3"])
    h = jax.nn.relu(h @ params["ew4"] + params["eb4"])
    rep = jnp.mean(h, axis=1)                                            # (B, H)

    T = target_x.shape[1]
    rep_r = jnp.repeat(rep[:, None, :], T, axis=1)                       # (B, T, H)
    dw1 = jnp.concatenate([params["dw1r"], params["dw1x"]], axis=0)      # (H+1, H)
    x = jnp.concatenate([rep_r, target_x], axis=-1)                      # (B, T, H+1)
    x = jax.nn.relu(x @ dw1 + params["db1"])
    x = jax.nn.relu(x @ params["dw2"] + params["db2"])
    x = jax.nn.relu(x @ params["dw3"] + params["db3"])
    x = x @ params["dw4"] + params["db4"]                                # (B, T, 2)
    mu, log_sigma = x[..., 0:1], x[..., 1:2]
    sigma = 0.1 + 0.9 * jax.nn.softplus(log_sigma)
    return mu, sigma


if __name__ == "__main__":
    key = jax.random.PRNGKey(0)
    kp, kx, ky, kt = jax.random.split(key, 4)

    B, S, T = 2, 16, 8
    context_x = jax.random.normal(kx, (B, S, 1), jnp.float32)
    context_y = jax.random.normal(ky, (B, S, 1), jnp.float32)
    target_x = jax.random.normal(kt, (B, T, 1), jnp.float32)

    params = init_params(kp)

    # f32 path: exact parity with the reference
    mu, sigma = cnp_forward(context_x, context_y, target_x, params)
    jax.block_until_ready((mu, sigma))

    mu_ref, sigma_ref = cnp_reference(context_x, context_y, target_x, params)
    assert jnp.allclose(mu, mu_ref, atol=1e-4, rtol=1e-4), \
        float(jnp.max(jnp.abs(mu - mu_ref)))
    assert jnp.allclose(sigma, sigma_ref, atol=1e-4, rtol=1e-4), \
        float(jnp.max(jnp.abs(sigma - sigma_ref)))

    # bf16 weight/activation path (v6e/v7x MXU option): loose parity check
    mu_bf, sigma_bf = cnp_forward(context_x, context_y, target_x, params,
                                  weight_dtype=jnp.bfloat16)
    jax.block_until_ready((mu_bf, sigma_bf))
    assert jnp.allclose(mu_bf, mu_ref, atol=5e-2, rtol=5e-2), \
        float(jnp.max(jnp.abs(mu_bf - mu_ref)))
    assert jnp.allclose(sigma_bf, sigma_ref, atol=5e-2, rtol=5e-2), \
        float(jnp.max(jnp.abs(sigma_bf - sigma_ref)))

    print("KERNEL_OK")
</pallas_src>

<mosaic_0001>
module attributes {stable_mosaic.version = 11 : i64} {
  func.func @_cnp_kernel(%arg0: i32, %arg1: memref<1x2x16xf32, #tpu.memory_space<vmem>>, %arg2: memref<1x1x8xf32, #tpu.memory_space<vmem>>, %arg3: memref<128x3xf32, #tpu.memory_space<vmem>>, %arg4: memref<6x128x128xf32, #tpu.memory_space<vmem>>, %arg5: memref<8x128xf32, #tpu.memory_space<vmem>>, %arg6: memref<128x7xf32, #tpu.memory_space<vmem>>, %arg7: memref<8x1xf32, #tpu.memory_space<vmem>>, %arg8: memref<1x8x8xf32, #tpu.memory_space<vmem>>) attributes {dimension_semantics = [#tpu.dimension_semantics<parallel>], iteration_bounds = array<i64: 2>, scalar_prefetch = 0 : i64, scratch_operands = 0 : i64, tpu.core_type = #tpu.core_type<tc>, window_params = [{transform_indices = @transform_0, window_bounds = array<i64: 1, 2, 16>}, {transform_indices = @transform_1, window_bounds = array<i64: 1, 1, 8>}, {pipeline_mode = #tpu.pipeline_mode<synchronous>, transform_indices = @transform_2, window_bounds = array<i64: 128, 3>}, {pipeline_mode = #tpu.pipeline_mode<synchronous>, transform_indices = @transform_3, window_bounds = array<i64: 6, 128, 128>}, {pipeline_mode = #tpu.pipeline_mode<synchronous>, transform_indices = @transform_4, window_bounds = array<i64: 8, 128>}, {pipeline_mode = #tpu.pipeline_mode<synchronous>, transform_indices = @transform_5, window_bounds = array<i64: 128, 7>}, {pipeline_mode = #tpu.pipeline_mode<synchronous>, transform_indices = @transform_6, window_bounds = array<i64: 8, 1>}, {transform_indices = @transform_7, window_bounds = array<i64: 1, 8, 8>}]} {
    %c0 = arith.constant 0 : index
    %c0_0 = arith.constant 0 : index
    %c0_1 = arith.constant 0 : index
    %0 = vector.load %arg1[%c0, %c0_0, %c0_1] : memref<1x2x16xf32, #tpu.memory_space<vmem>>, vector<1x1x16xf32>
    %1 = vector.shape_cast %0 : vector<1x1x16xf32> to vector<1x16xf32>
    %c0_2 = arith.constant 0 : index
    %c1 = arith.constant 1 : index
    %c0_3 = arith.constant 0 : index
    %2 = vector.load %arg1[%c0_2, %c1, %c0_3] : memref<1x2x16xf32, #tpu.memory_space<vmem>>, vector<1x1x16xf32>
    %3 = vector.shape_cast %2 : vector<1x1x16xf32> to vector<1x16xf32>
    %c0_4 = arith.constant 0 : index
    %c0_5 = arith.constant 0 : index
    %4 = vector.load %arg3[%c0_4, %c0_5] : memref<128x3xf32, #tpu.memory_space<vmem>>, vector<128x1xf32>
    %5 = vector.broadcast %4 : vector<128x1xf32> to vector<128x16xf32>
    %6 = vector.broadcast %1 : vector<1x16xf32> to vector<128x16xf32>
    %7 = arith.mulf %5, %6 : vector<128x16xf32>
    %c0_6 = arith.constant 0 : index
    %c1_7 = arith.constant 1 : index
    %8 = vector.load %arg3[%c0_6, %c1_7] : memref<128x3xf32, #tpu.memory_space<vmem>>, vector<128x1xf32>
    %9 = vector.broadcast %8 : vector<128x1xf32> to vector<128x16xf32>
    %10 = vector.broadcast %3 : vector<1x16xf32> to vector<128x16xf32>
    %11 = arith.mulf %9, %10 : vector<128x16xf32>
    %12 = arith.addf %7, %11 : vector<128x16xf32>
    %c0_8 = arith.constant 0 : index
    %c0_9 = arith.constant 0 : index
    %13 = vector.load %arg6[%c0_8, %c0_9] : memref<128x7xf32, #tpu.memory_space<vmem>>, vector<128x1xf32>
    %14 = vector.broadcast %13 : vector<128x1xf32> to vector<128x16xf32>
    %15 = arith.addf %12, %14 : vector<128x16xf32>
    %cst = arith.constant 0.000000e+00 : f32
    %16 = vector.broadcast %cst : f32 to vector<128x16xf32>
    %17 = arith.maximumf %15, %16 : vector<128x16xf32>
    %c0_10 = arith.constant 0 : index
    %c0_11 = arith.constant 0 : index
    %c0_12 = arith.constant 0 : index
    %18 = vector.load %arg4[%c0_10, %c0_11, %c0_12] : memref<6x128x128xf32, #tpu.memory_space<vmem>>, vector<1x128x128xf32>
    %19 = vector.shape_cast %18 : vector<1x128x128xf32> to vector<128x128xf32>
    %cst_13 = arith.constant dense<0.000000e+00> : vector<128x16xf32>
    %20 = tpu.matmul %19, %17, %cst_13 {dimension_numbers = #tpu.dot_dimension_numbers<[1], [0], [0], [1], [0, 0, 1, 1], [], []>} : vector<128x128xf32>, vector<128x16xf32>, vector<128x16xf32> -> vector<128x16xf32>
    %c0_14 = arith.constant 0 : index
    %c1_15 = arith.constant 1 : index
    %21 = vector.load %arg6[%c0_14, %c1_15] : memref<128x7xf32, #tpu.memory_space<vmem>>, vector<128x1xf32>
    %22 = vector.broadcast %21 : vector<128x1xf32> to vector<128x16xf32>
    %23 = arith.addf %20, %22 : vector<128x16xf32>
    %cst_16 = arith.constant 0.000000e+00 : f32
    %24 = vector.broadcast %cst_16 : f32 to vector<128x16xf32>
    %25 = arith.maximumf %23, %24 : vector<128x16xf32>
    %c1_17 = arith.constant 1 : index
    %c0_18 = arith.constant 0 : index
    %c0_19 = arith.constant 0 : index
    %26 = vector.load %arg4[%c1_17, %c0_18, %c0_19] : memref<6x128x128xf32, #tpu.memory_space<vmem>>, vector<1x128x128xf32>
    %27 = vector.shape_cast %26 : vector<1x128x128xf32> to vector<128x128xf32>
    %cst_20 = arith.constant dense<0.000000e+00> : vector<128x16xf32>
    %28 = tpu.matmul %27, %25, %cst_20 {dimension_numbers = #tpu.dot_dimension_numbers<[1], [0], [0], [1], [0, 0, 1, 1], [], []>} : vector<128x128xf32>, vector<128x16xf32>, vector<128x16xf32> -> vector<128x16xf32>
    %c0_21 = arith.constant 0 : index
    %c2 = arith.constant 2 : index
    %29 = vector.load %arg6[%c0_21, %c2] : memref<128x7xf32, #tpu.memory_space<vmem>>, vector<128x1xf32>
    %30 = vector.broadcast %29 : vector<128x1xf32> to vector<128x16xf32>
    %31 = arith.addf %28, %30 : vector<128x16xf32>
    %cst_22 = arith.constant 0.000000e+00 : f32
    %32 = vector.broadcast %cst_22 : f32 to vector<128x16xf32>
    %33 = arith.maximumf %31, %32 : vector<128x16xf32>
    %c2_23 = arith.constant 2 : index
    %c0_24 = arith.constant 0 : index
    %c0_25 = arith.constant 0 : index
    %34 = vector.load %arg4[%c2_23, %c0_24, %c0_25] : memref<6x128x128xf32, #tpu.memory_space<vmem>>, vector<1x128x128xf32>
    %35 = vector.shape_cast %34 : vector<1x128x128xf32> to vector<128x128xf32>
    %cst_26 = arith.constant dense<0.000000e+00> : vector<128x16xf32>
    %36 = tpu.matmul %35, %33, %cst_26 {dimension_numbers = #tpu.dot_dimension_numbers<[1], [0], [0], [1], [0, 0, 1, 1], [], []>} : vector<128x128xf32>, vector<128x16xf32>, vector<128x16xf32> -> vector<128x16xf32>
    %c0_27 = arith.constant 0 : index
    %c3 = arith.constant 3 : index
    %37 = vector.load %arg6[%c0_27, %c3] : memref<128x7xf32, #tpu.memory_space<vmem>>, vector<128x1xf32>
    %38 = vector.broadcast %37 : vector<128x1xf32> to vector<128x16xf32>
    %39 = arith.addf %36, %38 : vector<128x16xf32>
    %cst_28 = arith.constant 0.000000e+00 : f32
    %40 = vector.broadcast %cst_28 : f32 to vector<128x16xf32>
    %41 = arith.maximumf %39, %40 : vector<128x16xf32>
    %cst_29 = arith.constant dense<0.000000e+00> : vector<128xf32>
    %42 = vector.multi_reduction <add>, %41, %cst_29 [1] : vector<128x16xf32> to vector<128xf32>
    %43 = vector.shape_cast %42 : vector<128xf32> to vector<128x1xf32>
    %cst_30 = arith.constant 1.600000e+01 : f32
    %44 = vector.broadcast %cst_30 : f32 to vector<128x1xf32>
    %45 = arith.divf %43, %44 : vector<128x1xf32>
    %c0_31 = arith.constant 0 : index
    %c0_32 = arith.constant 0 : index
    %c0_33 = arith.constant 0 : index
    %46 = vector.load %arg2[%c0_31, %c0_32, %c0_33] : memref<1x1x8xf32, #tpu.memory_space<vmem>>, vector<1x1x8xf32>
    %47 = vector.shape_cast %46 : vector<1x1x8xf32> to vector<1x8xf32>
    %c3_34 = arith.constant 3 : index
    %c0_35 = arith.constant 0 : index
    %c0_36 = arith.constant 0 : index
    %48 = vector.load %arg4[%c3_34, %c0_35, %c0_36] : memref<6x128x128xf32, #tpu.memory_space<vmem>>, vector<1x128x128xf32>
    %49 = vector.shape_cast %48 : vector<1x128x128xf32> to vector<128x128xf32>
    %cst_37 = arith.constant dense<0.000000e+00> : vector<128x1xf32>
    %50 = tpu.matmul %49, %45, %cst_37 {dimension_numbers = #tpu.dot_dimension_numbers<[1], [0], [0], [1], [0, 0, 1, 1], [], []>} : vector<128x128xf32>, vector<128x1xf32>, vector<128x1xf32> -> vector<128x1xf32>
    %c0_38 = arith.constant 0 : index
    %c4 = arith.constant 4 : index
    %51 = vector.load %arg6[%c0_38, %c4] : memref<128x7xf32, #tpu.memory_space<vmem>>, vector<128x1xf32>
    %52 = arith.addf %50, %51 : vector<128x1xf32>
    %c0_39 = arith.constant 0 : index
    %c2_40 = arith.constant 2 : index
    %53 = vector.load %arg3[%c0_39, %c2_40] : memref<128x3xf32, #tpu.memory_space<vmem>>, vector<128x1xf32>
    %54 = vector.broadcast %53 : vector<128x1xf32> to vector<128x8xf32>
    %55 = vector.broadcast %47 : vector<1x8xf32> to vector<128x8xf32>
    %56 = arith.mulf %54, %55 : vector<128x8xf32>
    %57 = vector.broadcast %52 : vector<128x1xf32> to vector<128x8xf32>
    %58 = arith.addf %57, %56 : vector<128x8xf32>
    %cst_41 = arith.constant 0.000000e+00 : f32
    %59 = vector.broadcast %cst_41 : f32 to vector<128x8xf32>
    %60 = arith.maximumf %58, %59 : vector<128x8xf32>
    %c4_42 = arith.constant 4 : index
    %c0_43 = arith.constant 0 : index
    %c0_44 = arith.constant 0 : index
    %61 = vector.load %arg4[%c4_42, %c0_43, %c0_44] : memref<6x128x128xf32, #tpu.memory_space<vmem>>, vector<1x128x128xf32>
    %62 = vector.shape_cast %61 : vector<1x128x128xf32> to vector<128x128xf32>
    %cst_45 = arith.constant dense<0.000000e+00> : vector<128x8xf32>
    %63 = tpu.matmul %62, %60, %cst_45 {dimension_numbers = #tpu.dot_dimension_numbers<[1], [0], [0], [1], [0, 0, 1, 1], [], []>} : vector<128x128xf32>, vector<128x8xf32>, vector<128x8xf32> -> vector<128x8xf32>
    %c0_46 = arith.constant 0 : index
    %c5 = arith.constant 5 : index
    %64 = vector.load %arg6[%c0_46, %c5] : memref<128x7xf32, #tpu.memory_space<vmem>>, vector<128x1xf32>
    %65 = vector.broadcast %64 : vector<128x1xf32> to vector<128x8xf32>
    %66 = arith.addf %63, %65 : vector<128x8xf32>
    %cst_47 = arith.constant 0.000000e+00 : f32
    %67 = vector.broadcast %cst_47 : f32 to vector<128x8xf32>
    %68 = arith.maximumf %66, %67 : vector<128x8xf32>
    %c5_48 = arith.constant 5 : index
    %c0_49 = arith.constant 0 : index
    %c0_50 = arith.constant 0 : index
    %69 = vector.load %arg4[%c5_48, %c0_49, %c0_50] : memref<6x128x128xf32, #tpu.memory_space<vmem>>, vector<1x128x128xf32>
    %70 = vector.shape_cast %69 : vector<1x128x128xf32> to vector<128x128xf32>
    %cst_51 = arith.constant dense<0.000000e+00> : vector<128x8xf32>
    %71 = tpu.matmul %70, %68, %cst_51 {dimension_numbers = #tpu.dot_dimension_numbers<[1], [0], [0], [1], [0, 0, 1, 1], [], []>} : vector<128x128xf32>, vector<128x8xf32>, vector<128x8xf32> -> vector<128x8xf32>
    %c0_52 = arith.constant 0 : index
    %c6 = arith.constant 6 : index
    %72 = vector.load %arg6[%c0_52, %c6] : memref<128x7xf32, #tpu.memory_space<vmem>>, vector<128x1xf32>
    %73 = vector.broadcast %72 : vector<128x1xf32> to vector<128x8xf32>
    %74 = arith.addf %71, %73 : vector<128x8xf32>
    %cst_53 = arith.constant 0.000000e+00 : f32
    %75 = vector.broadcast %cst_53 : f32 to vector<128x8xf32>
    %76 = arith.maximumf %74, %75 : vector<128x8xf32>
    %c0_54 = arith.constant 0 : index
    %c0_55 = arith.constant 0 : index
    %77 = vector.load %arg5[%c0_54, %c0_55] : memref<8x128xf32, #tpu.memory_space<vmem>>, vector<8x128xf32>
    %cst_56 = arith.constant dense<0.000000e+00> : vector<8x8xf32>
    %78 = tpu.matmul %77, %76, %cst_56 {dimension_numbers = #tpu.dot_dimension_numbers<[1], [0], [0], [1], [0, 0, 1, 1], [], []>} : vector<8x128xf32>, vector<128x8xf32>, vector<8x8xf32> -> vector<8x8xf32>
    %c0_57 = arith.constant 0 : index
    %c0_58 = arith.constant 0 : index
    %79 = vector.load %arg7[%c0_57, %c0_58] : memref<8x1xf32, #tpu.memory_space<vmem>>, vector<8x1xf32>
    %80 = vector.broadcast %79 : vector<8x1xf32> to vector<8x8xf32>
    %81 = arith.addf %78, %80 : vector<8x8xf32>
    %82 = tpu.iota {dimensions = array<i32: 0>} : vector<8x8xi32>
    %cst_59 = arith.constant 0.000000e+00 : f32
    %83 = vector.broadcast %cst_59 : f32 to vector<8x8xf32>
    %84 = arith.maximumf %81, %83 : vector<8x8xf32>
    %85 = math.absf %81 : vector<8x8xf32>
    %cst_60 = arith.constant 0.000000e+00 : f32
    %86 = vector.broadcast %cst_60 : f32 to vector<8x8xf32>
    %87 = arith.subf %86, %85 : vector<8x8xf32>
    %88 = math.exp %87 : vector<8x8xf32>
    %89 = math.log1p %88 : vector<8x8xf32>
    %90 = arith.addf %84, %89 : vector<8x8xf32>
    %cst_61 = arith.constant 0.899999976 : f32
    %91 = vector.broadcast %cst_61 : f32 to vector<8x8xf32>
    %92 = arith.mulf %91, %90 : vector<8x8xf32>
    %cst_62 = arith.constant 1.000000e-01 : f32
    %93 = vector.broadcast %cst_62 : f32 to vector<8x8xf32>
    %94 = arith.addf %93, %92 : vector<8x8xf32>
    %c1_i32 = arith.constant 1 : i32
    %95 = vector.broadcast %c1_i32 : i32 to vector<8x8xi32>
    %96 = arith.cmpi eq, %82, %95 : vector<8x8xi32>
    %97 = arith.select %96, %94, %81 : vector<8x8xi1>, vector<8x8xf32>
    %c0_63 = arith.constant 0 : index
    %c0_64 = arith.constant 0 : index
    %c0_65 = arith.constant 0 : index
    %98 = vector.load %arg8[%c0_63, %c0_64, %c0_65] : memref<1x8x8xf32, #tpu.memory_space<vmem>>, vector<1x8x8xf32>
    %99 = vector.shape_cast %98 : vector<1x8x8xf32> to vector<8x8xf32>
    %100 = vector.shape_cast %97 : vector<8x8xf32> to vector<1x8x8xf32>
    tpu.vector_store %arg8[%c0_63, %c0_64, %c0_65], %100 {strides = array<i32>} : memref<1x8x8xf32, #tpu.memory_space<vmem>>, vector<1x8x8xf32>,
    return
  }
  func.func @transform_0(%arg0: i32) -> (i32, i32, i32) {
    %c0_i32 = arith.constant 0 : i32
    %c0_i32_0 = arith.constant 0 : i32
    %c0_i32_1 = arith.constant 0 : i32
    return %arg0, %c0_i32, %c0_i32_0 : i32, i32, i32
  }
  func.func @transform_1(%arg0: i32) -> (i32, i32, i32) {
    %c0_i32 = arith.constant 0 : i32
    %c0_i32_0 = arith.constant 0 : i32
    %c0_i32_1 = arith.constant 0 : i32
    return %arg0, %c0_i32, %c0_i32_0 : i32, i32, i32
  }
  func.func @transform_2(%arg0: i32) -> (i32, i32) {
    %c0_i32 = arith.constant 0 : i32
    %c0_i32_0 = arith.constant 0 : i32
    %c0_i32_1 = arith.constant 0 : i32
    return %c0_i32, %c0_i32_0 : i32, i32
  }
  func.func @transform_3(%arg0: i32) -> (i32, i32, i32) {
    %c0_i32 = arith.constant 0 : i32
    %c0_i32_0 = arith.constant 0 : i32
    %c0_i32_1 = arith.constant 0 : i32
    %c0_i32_2 = arith.constant 0 : i32
    return %c0_i32, %c0_i32_0, %c0_i32_1 : i32, i32, i32
  }
  func.func @transform_4(%arg0: i32) -> (i32, i32) {
    %c0_i32 = arith.constant 0 : i32
    %c0_i32_0 = arith.constant 0 : i32
    %c0_i32_1 = arith.constant 0 : i32
    return %c0_i32, %c0_i32_0 : i32, i32
  }
  func.func @transform_5(%arg0: i32) -> (i32, i32) {
    %c0_i32 = arith.constant 0 : i32
    %c0_i32_0 = arith.constant 0 : i32
    %c0_i32_1 = arith.constant 0 : i32
    return %c0_i32, %c0_i32_0 : i32, i32
  }
  func.func @transform_6(%arg0: i32) -> (i32, i32) {
    %c0_i32 = arith.constant 0 : i32
    %c0_i32_0 = arith.constant 0 : i32
    %c0_i32_1 = arith.constant 0 : i32
    return %c0_i32, %c0_i32_0 : i32, i32
  }
  func.func @transform_7(%arg0: i32) -> (i32, i32, i32) {
    %c0_i32 = arith.constant 0 : i32
    %c0_i32_0 = arith.constant 0 : i32
    %c0_i32_1 = arith.constant 0 : i32
    return %arg0, %c0_i32, %c0_i32_0 : i32, i32, i32
  }
}

</mosaic_0001>

<bundles_post_ra>
// kernel: tpu_custom_call.1
= control target key start
LH: loop header
LB: loop body
LE: loop exit
PB: predicated region body
PF: predicated region fallthrough
CT: control target
= control target key end

     0   :  { %12 = vsyncpa [#allocation3], 0  ;;  %s4127_s0 = inlined_call_operand.vmem [shape: f32[2,2,16], index: 0, kind: input, shape index: {}]   ;;  %s4128_s1 = inlined_call_operand.vmem [shape: f32[2,1,8], index: 1, kind: input, shape index: {}]   ;;  %s4129_s2 = inlined_call_operand.vmem [shape: f32[128,3], index: 2, kind: input, shape index: {}]   ;;  %s4130_s3 = inlined_call_operand.hbm [shape: f32[6,128,128], index: 3, kind: input, shape index: {}]   ;;  %s4131_s4 = inlined_call_operand.vmem [shape: f32[8,128], index: 4, kind: input, shape index: {}]   ;;  %s4132_s5 = inlined_call_operand.vmem [shape: f32[128,7], index: 5, kind: input, shape index: {}]   ;;  %s4133_s6 = inlined_call_operand.vmem [shape: f32[8,1], index: 6, kind: input, shape index: {}]   ;;  %s4134_s7 = inlined_call_operand.hbm [shape: f32[2,8,8], index: 7, kind: output, shape index: {}]  }
   0x1   :  { %13 = vsyncpa [#allocation4], 0 }
   0x2   :  { %15 = vsyncpa [#allocation4 + $0x1], 0  ;;  %s3405_s24 = smov 0   ;;  %s3407_s25 = smov 0  }
   0x3   :  { %s3409_s26 = smov 0   ;;  %s3411_s27 = smov 0  }
   0x4 LB: > { %s3426_s28 = sadd.s32 4294967295, %s3350_s27   ;;  %s2527_s29 = sadd.s32 4294967294, %s3350_s27   ;;  %s3350_s27 = sphi %s3411_s27, %s4142_s27   ;;  %s3346_s26 = sphi %s3409_s26, %s4141_s26   ;;  %s3342_s25 = sphi %s3407_s25, %s4140_s25   ;;  %s3338_s24 = sphi %s3405_s24, %s4139_s24  }
   0x5   : > { %s3430_s30 = sadd.s32 1, %s3350_s27   ;;  %s185_s8 = sadd.s32 1, %s3346_s26 }
   0x6   : > { %s182_s9 = ssub.s32 %s3350_s27, %s3430_s30  ;;  %p195_p0 = scmp.ne.s32.totalorder %s3346_s26, %s3342_s25 }
   0x7   : > { %p183_p1 = scmp.eq.s32.totalorder %s182_s9, 0  ;;  %p196_p2 = scmp.eq.s32.totalorder %s3426_s28, 1 }
   0x8   : > { %p201_p3 = scmp.ne.s32.totalorder %s3342_s25, %s3338_s24  ;;  %p202_p4 = scmp.eq.s32.totalorder %s2527_s29, 1 }
   0x9   : > { %s3441_s10 = scalar_select %p183_p1, %s3346_s26, %s185_s8  }
   0xa   : > { %p3443_p5 = por %p196_p2, %p195_p0  ;;  %p3447_p6 = por %p202_p4, %p201_p3 }
   0xb   : > { %p2528_p7 = scmp.ge.s32.totalorder %s3350_s27, 1  ;;  %p209_p8 = scmp.lt.s32.totalorder %s3350_s27, 3 }
   0xc   : > { %s4136_s12 = scalar_select %p3447_p6, 1, 0 }
   0xd   : > { %p3136_p9 = scmp.eq.s32.totalorder %s3426_s28, 0  ;;  %p3454_p10 = pnand %p2528_p7, %p209_p8 }
   0xe   : > { %s3352_s14 = smov [#allocation2]  }
   0xf   : > { %s224_s15 = sshll.u32 %s3352_s14, 4  ;;  %p3128_p11 = pneg %p3454_p10  ;;  %s225_s15 = int_to_ptr.vmem [resolvable:$true] %s224_s15 }
  0x10   : > { %s3271_s16 = scalar_lea.vmem %s225_s15, 12288  ;;  %p3279_p3 = scmp.lt.s32.totalorder %s225_s15, %s225_s15 }
  0x11   : > { %p3129_p12 = pnand %p3136_p9, %p3128_p11  ;;  %p3272_p0 = scmp.ne.s32.totalorder %s225_s15, %s3271_s16 }
  0x12   : > { %p3280_p4 = scmp.lt.s32.totalorder %s3271_s16, %s3271_s16 }
  0x13   : > { %p3262_p13 = pneg %p3129_p12 }
  0x14   : > { %p3281_p6 = por %p3280_p4, %p3279_p3 }
  0x15   : > { %p3274_p1 = pnand %p3272_p0, %p3262_p13 }
  0x17   : > { %p3275_p2 = pneg %p3274_p1 }
  0x19   : > { %p3282_p7 = pnand %p3281_p6, %p3275_p2 }
  0x1b   : > { %3285 = shalt.err (!%p3282_p7)
}
  0x1c   : > { %s3353_s17 = smov 128   ;;  %s3354_s18 = smov 8  }
  0x1d   : > { %3131 = dma.hbm_to_vmem [thread:$0]  (!%p3129_p12), %s4130_s3, 12288, %s225_s15, [#allocation3], %s3353_s17, %s3353_s17, %s3354_s18  }
  0x1e   : > { %262 = sbr.rel (%p3454_p10) target bundleno = 2368 (0x940), region = 48 }
  0x23   : > { %3329 = dma.done.wait (%p3136_p9), [#allocation3], 12288  }
  0x24   : > { %3331 = vsyncadd (%p3136_p9), [#allocation3], 4294955008  ;;  %v3355_v0 = vmov 1   ;;  %v3356_v1 = vmov 0   ;;  %v320_v2 = vld [vmem:[%s4129_s2 + $0x78] sm:$0xff]  ;;  %v319_v3 = vld [vmem:[%s4129_s2 + $0x70] sm:$0xff] }
  0x25   : > { %3183 = vset.pattern.permute.xlu0 %v3355_v0  ;;  %3184 = vset.pattern.permute.xlu1 %v3356_v1  ;;  %v318_v4 = vld [vmem:[%s4129_s2 + $0x68] sm:$0xff]  ;;  %v315_v5 = vld [vmem:[%s4129_s2 + $0x50] sm:$0xff]  ;;  %v3493_v7 = vld [vmem:[%s4132_s5 + $0x78] sm:$0xff]  ;;  %p296_p6 = scmp.lt.s32.totalorder %s3426_s28, 1  ;;  %vm1374_vm0 = vcmask 130048   ;;  %s3359_s22 = smov 124  }
  0x26   : > { %482 = vperm.xlu0 %3183, %v320_v2   ;;  %393 = vperm.xlu1 %3184, %v319_v3   ;;  %v314_v6 = vld [vmem:[%s4129_s2 + $0x48] sm:$0xff]  ;;  %v311_v8 = vld [vmem:[%s4129_s2 + $0x30] sm:$0xff]  ;;  %v317_v9 = vld [vmem:[%s4129_s2 + $0x60] sm:$0xff]  ;;  %vm3363_vm1 = vmmov 0   ;;  %s293_s14 = sand.u32 1, %s3342_s25   ;;  %s2539_s17 = sshll.u32 %s3426_s28, 7 }
  0x27   : > { %v310_v10 = vld [vmem:[%s4129_s2 + $0x28] sm:$0xff]  ;;  %v3509_v11 = vld [vmem:[%s4132_s5 + $0x70] sm:$0xff]  ;;  %v316_v14 = vld [vmem:[%s4129_s2 + $0x58] sm:$0xff]  ;;  %s3664_s15 = scalar_select %p296_p6, %s3426_s28, 1  ;;  %vm2431_vm4 = vcmask 64512  }
  0x28   : > { %v3514_v12 = vld [vmem:[%s4129_s2 + $0x10] sm:$0xff]  ;;  %v3522_v13 = vld [vmem:[%s4129_s2 + $0x8] sm:$0xff]  ;;  %v3534_v15 = vld [vmem:[%s4132_s5 + $0x60] sm:$0xff]  ;;  %s4092_s23 = scalar_lea.hbm %s4134_s7, %s2539_s17  ;;  %s2434_s29 = scalar_lea.sflag [#allocation4], %s293_s14 }
  0x29   : > { %v3540_v16 = vld [vmem:[%s4132_s5 + $0x68] sm:$0xff]  ;;  %v3545_v17 = vld [vmem:[%s4132_s5 + $0x58] sm:$0xff]  ;;  %v313_v18 = vld [vmem:[%s4129_s2 + $0x40] sm:$0xff]  ;;  %s2534_s16 = sshll.u32 %s3664_s15, 1  ;;  %s3364_s28 = smov [#allocation5]  }
  0x2a   : > { %3185 = vset.pattern.permute.xlu1 %v3355_v0  ;;  %474 = vperm.xlu0 %3183, %v318_v4   ;;  %v312_v19 = vld [vmem:[%s4129_s2 + $0x38] sm:$0xff]  ;;  %v3559_v20 = vld [vmem:[%s4132_s5 + $0x50] sm:$0xff]  ;;  %v3564_v21 = vld [vmem:[%s4132_s5 + $0x48] sm:$0xff]  ;;  %s299_s19 = scalar_lea.vmem %s4127_s0, %s2534_s16  ;;  %s2533_s16 = sshll.u32 %s293_s14, 3 }
  0x2b   : > { %478 = vperm.xlu1 %3185, %v319_v3   ;;  %v309_v22 = vld [vmem:[%s4129_s2 + $0x20] sm:$0xff]  ;;  %v308_v23 = vld [vmem:[%s4129_s2 + $0x18] sm:$0xff]  ;;  %v3580_v24 = vld [vmem:[%s4132_s5 + $0x28] sm:$0xff]  ;;  %s295_s18 = scalar_lea.vmem [#allocation5], %s2533_s16 }
  0x2c   : > { %v3585_v25 = vld [vmem:[%s4132_s5 + $0x40] sm:$0xff]  ;;  %v3595_v27 = vld [vmem:[%s4132_s5 + $0x8] sm:$0xff]  ;;  %v3600_v28 = vld [vmem:[%s4132_s5 + $0x38] sm:$0xff] }
  0x2d   : > { %v305_v26 = vld [vmem:[%s4129_s2] sm:$0xff]  ;;  %v3610_v29 = vld [vmem:[%s4132_s5 + $0x30] sm:$0xff]  ;;  %v3638_v32 = vld [vmem:[%s4132_s5 + $0x18] sm:$0xff] }
  0x2e   : > { %462 = vperm.xlu0 %3183, %v315_v5   ;;  %v3624_v30 = vld [vmem:[%s4132_s5 + $0x20] sm:$0xff]  ;;  %v3631_v31 = vld [vmem:[%s4132_s5 + $0x10] sm:$0xff] }
  0x2f   : > { %3186 = vset.pattern.permute.xlu1 %v3356_v1  ;;  %v3643_v33 = vld [vmem:[%s4132_s5] sm:$0xff] }
  0x30   : > { %388 = vperm.xlu1 %3186, %v318_v4   ;;  %v649_v36 = vld [vmem:[#allocation2] sm:$0xff] }
  0x31   : > { %2783 = vmatprep.mubr.f32.mxu0 %v649_v36  ;;  %v3676_v49 = vld [vmem:[%s299_s19 + $0x1] ss:$0 sm:$0xff]  ;;  %v3679_v51 = vld [vmem:[%s299_s19] ss:$0 sm:$0xff]  ;;  %s2447_s19 = sshll.u32 %s295_s18, 4  ;;  %s2448_s19 = int_to_ptr.vmem [resolvable:$true] %s2447_s19 }
  0x32   : > { %458 = vperm.xlu0 %3183, %v314_v6  }
  0x34   : > { %614 = vperm.xlu1 %3186, %v3493_v7  }
  0x36   : > { %446 = vperm.xlu0 %3183, %v311_v8  }
  0x38   : > { %3187 = vset.pattern.permute.xlu1 %v3355_v0 }
  0x39   : > { %470 = vperm.xlu1 %3187, %v317_v9  }
  0x3a   : > { %442 = vperm.xlu0 %3183, %v310_v10  }
  0x3d   : > { %3188 = vset.pattern.permute.xlu1 %v3356_v1 }
  0x3e   : > { %609 = vperm.xlu1 %3188, %v3509_v11   ;;  %430 = vperm.xlu0 %3183, %v3514_v12  }
  0x42   : > { %3189 = vset.pattern.permute.xlu1 %v3355_v0  ;;  %426 = vperm.xlu0 %3183, %v3522_v13  }
  0x43   : > { %466 = vperm.xlu1 %3189, %v316_v14  }
  0x46   : > { %3199 = vset.pattern.permute.xlu0 %v3356_v1 }
  0x47   : > { %3190 = vset.pattern.permute.xlu1 %v3356_v1  ;;  %398 = vperm.xlu0 %3199, %v320_v2  }
  0x48   : > { %373 = vperm.xlu1 %3190, %v315_v5  }
  0x4b   : > { %383 = vperm.xlu0 %3199, %v317_v9  }
  0x4c   : > { %599 = vperm.xlu1 %3190, %v3534_v15  }
  0x4f   : > { %378 = vperm.xlu0 %3199, %v316_v14  }
  0x50   : > { %368 = vperm.xlu1 %3190, %v314_v6  }
  0x53   : > { %604 = vperm.xlu0 %3199, %v3540_v16  }
  0x54   : > { %594 = vperm.xlu1 %3190, %v3545_v17  }
  0x57   : > { %363 = vperm.xlu0 %3199, %v313_v18  }
  0x58   : > { %3191 = vset.pattern.permute.xlu1 %v3355_v0 }
  0x59   : > { %454 = vperm.xlu1 %3191, %v313_v18  }
  0x5b   : > { %358 = vperm.xlu0 %3199, %v312_v19  }
  0x5d   : > { %3192 = vset.pattern.permute.xlu1 %v3356_v1 }
  0x5e   : > { %589 = vperm.xlu1 %3192, %v3559_v20  }
  0x5f   : > { %584 = vperm.xlu0 %3199, %v3564_v21  }
  0x62   : > { %3193 = vset.pattern.permute.xlu1 %v3355_v0 }
  0x63   : > { %450 = vperm.xlu1 %3193, %v312_v19   ;;  %343 = vperm.xlu0 %3199, %v309_v22  }
  0x67   : > { %3194 = vset.pattern.permute.xlu1 %v3356_v1  ;;  %338 = vperm.xlu0 %3199, %v308_v23  }
  0x68   : > { %353 = vperm.xlu1 %3194, %v311_v8  }
  0x6b   : > { %564 = vperm.xlu0 %3199, %v3580_v24  }
  0x6c   : > { %579 = vperm.xlu1 %3194, %v3585_v25  }
  0x6f   : > { %323 = vperm.xlu0 %3199, %v305_v26  }
  0x70   : > { %348 = vperm.xlu1 %3194, %v310_v10  }
  0x73   : > { %544 = vperm.xlu0 %3199, %v3595_v27  }
  0x74   : > { %574 = vperm.xlu1 %3194, %v3600_v28  }
  0x77   : > { %3202 = vset.pattern.permute.xlu0 %v3355_v0 }
  0x78   : > { %3195 = vset.pattern.permute.xlu1 %v3355_v0  ;;  %726 = vperm.xlu0 %3202, %v3493_v7  }
  0x79   : > { %438 = vperm.xlu1 %3195, %v309_v22  }
  0x7c   : > { %714 = vperm.xlu0 %3202, %v3534_v15  }
  0x7d   : > { %3196 = vset.pattern.permute.xlu1 %v3356_v1 }
  0x7e   : > { %569 = vperm.xlu1 %3196, %v3610_v29  }
  0x80   : > { %706 = vperm.xlu0 %3202, %v3559_v20  }
  0x82   : > { %3197 = vset.pattern.permute.xlu1 %v3355_v0 }
  0x83   : > { %434 = vperm.xlu1 %3197, %v308_v23  }
  0x84   : > { %698 = vperm.xlu0 %3202, %v3585_v25  }
  0x87   : > { %3198 = vset.pattern.permute.xlu1 %v3356_v1 }
  0x88   : > { %333 = vperm.xlu1 %3198, %v3514_v12   ;;  %690 = vperm.xlu0 %3202, %v3610_v29  }
  0x8c   : > { %559 = vperm.xlu1 %3198, %v3624_v30   ;;  %682 = vperm.xlu0 %3202, %v3624_v30  }
  0x90   : > { %328 = vperm.xlu1 %3198, %v3522_v13   ;;  %674 = vperm.xlu0 %3202, %v3631_v31  }
  0x94   : > { %554 = vperm.xlu1 %3198, %v3638_v32   ;;  %666 = vperm.xlu0 %3202, %v3643_v33  }
  0x98   : > { %3200 = vset.pattern.permute.xlu1 %v3355_v0 }
  0x99   : > { %422 = vperm.xlu1 %3200, %v305_v26  }
  0x9d   : > { %3201 = vset.pattern.permute.xlu1 %v3356_v1 }
  0x9e   : > { %549 = vperm.xlu1 %3201, %v3631_v31  }
  0xa1   : > { %v394_v34 = vpop.permute.xlu1 %393  ;;  %v483_v35 = vpop.permute.xlu0 %482 }
  0xa2   : > { %539 = vperm.xlu1 %3201, %v3643_v33   ;;  %v504_v52 = vmul.f32 %v3676_v49, %v483_v35  ;;  %v419_v55 = vmul.f32 %v3679_v51, %v394_v34 }
  0xa5   : > { %v475_v37 = vpop.permute.xlu0 %474 }
  0xa6   : > { %v479_v38 = vpop.permute.xlu1 %478  ;;  %3203 = vset.pattern.permute.xlu1 %v3355_v0  ;;  %v502_v2 = vmul.f32 %v3676_v49, %v475_v37 }
  0xa7   : > { %722 = vperm.xlu1 %3203, %v3509_v11   ;;  %v503_v53 = vmul.f32 %v3676_v49, %v479_v38 }
  0xa9   : > { %v463_v39 = vpop.permute.xlu0 %462  ;;  %v519_v58 = vadd.f32 %v503_v53, %v419_v55 }
  0xaa   : > { %v499_v38 = vmul.f32 %v3676_v49, %v463_v39 }
  0xab   : > { %v389_v40 = vpop.permute.xlu1 %388  ;;  %718 = vperm.xlu1 %3203, %v3540_v16  }
  0xac   : > { %v418_v3 = vmul.f32 %v3679_v51, %v389_v40 }
  0xad   : > { %v3654_v41 = vpop.permute.xlu0 %458 }
  0xae   : > { %v518_v14 = vadd.f32 %v502_v2, %v418_v3 }
  0xaf   : > { %v615_v42 = vpop.permute.xlu1 %614  ;;  %710 = vperm.xlu1 %3203, %v3545_v17  }
  0xb1   : > { %v3657_v43 = vpop.permute.xlu0 %446 }
  0xb3   : > { %702 = vperm.xlu1 %3203, %v3564_v21  }
  0xb4   : > { %v471_v44 = vpop.permute.xlu1 %470 }
  0xb5   : > { %v3661_v45 = vpop.permute.xlu0 %442  ;;  %v501_v4 = vmul.f32 %v3676_v49, %v471_v44  ;;  %v498_v44 = vmul.f32 %v3676_v49, %v3654_v41 }
  0xb7   : > { %694 = vperm.xlu1 %3203, %v3600_v28  }
  0xb9   : > { %v610_v46 = vpop.permute.xlu1 %609  ;;  %v3667_v47 = vpop.permute.xlu0 %430 }
  0xba   : > { %v631_v61 = vadd.f32 %v610_v46, %v519_v58 }
  0xbb   : > { %686 = vperm.xlu1 %3203, %v3580_v24  }
  0xbc   : > { %v647_v8 = vmax.f32 %v631_v61, 0.0 }
  0xbd   : > { %v3674_v48 = vpop.permute.xlu0 %426 }
  0xbe   : > { %v467_v50 = vpop.permute.xlu1 %466 }
  0xbf   : > { %678 = vperm.xlu1 %3203, %v3638_v32   ;;  %v500_v9 = vmul.f32 %v3676_v49, %v467_v50 }
  0xc2   : > { %v399_v54 = vpop.permute.xlu0 %398 }
  0xc3   : > { %v420_v56 = vmul.f32 %v3679_v51, %v399_v54  ;;  %v374_v57 = vpop.permute.xlu1 %373  ;;  %670 = vperm.xlu1 %3203, %v3595_v27  }
  0xc4   : > { %v415_v40 = vmul.f32 %v3679_v51, %v374_v57 }
  0xc5   : > { %v520_v59 = vadd.f32 %v504_v52, %v420_v56 }
  0xc6   : > { %v384_v60 = vpop.permute.xlu0 %383  ;;  %v515_v53 = vadd.f32 %v499_v38, %v415_v40 }
  0xc7   : > { %v417_v62 = vmul.f32 %v3679_v51, %v384_v60  ;;  %v600_v63 = vpop.permute.xlu1 %599  ;;  %v632_v0 = vadd.f32 %v615_v42, %v520_v59 }
  0xc9   : > { %v648_v5 = vmax.f32 %v632_v0, 0.0  ;;  %v517_v10 = vadd.f32 %v501_v4, %v417_v62 }
  0xca   : > { %v379_v6 = vpop.permute.xlu0 %378 }
  0xcb   : > { %v416_v12 = vmul.f32 %v3679_v51, %v379_v6  ;;  %v369_v13 = vpop.permute.xlu1 %368  ;;  %2751 = vmatprep.subr.mxu0 %v648_v5  ;;  %v629_v22 = vadd.f32 %v600_v63, %v517_v10 }
  0xcc   : > { %2752 = vmatpush3.msra.mxu0 %v648_v5  ;;  %v414_v46 = vmul.f32 %v3679_v51, %v369_v13 }
  0xcd   : > { %2753 = vmatprep.subr.mxu0 %v647_v8  ;;  %v516_v18 = vadd.f32 %v500_v9, %v416_v12  ;;  %v645_v37 = vmax.f32 %v629_v22, 0.0 }
  0xce   : > { %v605_v19 = vpop.permute.xlu0 %604  ;;  %2754 = vmatpush3.msra.mxu0 %v647_v8  ;;  %v514_v55 = vadd.f32 %v498_v44, %v414_v46 }
  0xcf   : > { %v630_v23 = vadd.f32 %v605_v19, %v518_v14  ;;  %v595_v26 = vpop.permute.xlu1 %594  ;;  %v494_v19 = vmul.f32 %v3676_v49, %v3661_v45 }
  0xd0   : > { %v628_v35 = vadd.f32 %v595_v26, %v516_v18  ;;  %v495_v26 = vmul.f32 %v3676_v49, %v3657_v43 }
  0xd1   : > { %v646_v34 = vmax.f32 %v630_v23, 0.0 }
  0xd2   : > { %v364_v36 = vpop.permute.xlu0 %363  ;;  %v644_v50 = vmax.f32 %v628_v35, 0.0 }
  0xd3   : > { %2755 = vmatprep.subr.mxu0 %v646_v34  ;;  %v413_v41 = vmul.f32 %v3679_v51, %v364_v36 }
  0xd4   : > { %v455_v42 = vpop.permute.xlu1 %454  ;;  %2756 = vmatpush3.msra.mxu0 %v646_v34 }
  0xd5   : > { %2757 = vmatprep.subr.mxu0 %v645_v37  ;;  %v497_v61 = vmul.f32 %v3676_v49, %v455_v42 }
  0xd6   : > { %v359_v52 = vpop.permute.xlu0 %358  ;;  %2758 = vmatpush3.msra.mxu0 %v645_v37 }
  0xd7   : > { %2759 = vmatprep.subr.mxu0 %v644_v50  ;;  %v513_v63 = vadd.f32 %v497_v61, %v413_v41  ;;  %v412_v3 = vmul.f32 %v3679_v51, %v359_v52 }
  0xd8   : > { %2760 = vmatpush3.msra.mxu0 %v644_v50 }
  0xd9   : > { %v590_v54 = vpop.permute.xlu1 %589 }
  0xda   : > { %v627_v56 = vadd.f32 %v590_v54, %v515_v53  ;;  %v585_v39 = vpop.permute.xlu0 %584 }
  0xdb   : > { %v626_v58 = vadd.f32 %v585_v39, %v514_v55 }
  0xdc   : > { %v643_v57 = vmax.f32 %v627_v56, 0.0 }
  0xdd   : > { %v642_v59 = vmax.f32 %v626_v58, 0.0 }
  0xde   : > { %v451_v60 = vpop.permute.xlu1 %450  ;;  %2761 = vmatprep.subr.mxu0 %v643_v57  ;;  %v344_v8 = vpop.permute.xlu0 %343 }
  0xdf   : > { %2762 = vmatpush3.msra.mxu0 %v643_v57  ;;  %v496_v4 = vmul.f32 %v3676_v49, %v451_v60  ;;  %v409_v52 = vmul.f32 %v3679_v51, %v344_v8 }
  0xe0   : > { %2763 = vmatprep.subr.mxu0 %v642_v59 }
  0xe1   : > { %2764 = vmatpush3.msra.mxu0 %v642_v59  ;;  %v512_v9 = vadd.f32 %v496_v4, %v412_v3  ;;  %v491_v3 = vmul.f32 %v3676_v49, %v3667_v47  ;;  %v650_v47 = vld [vmem:[#allocation2 + $0x8] sm:$0xff] }
  0xe2   : > { %v339_v18 = vpop.permute.xlu0 %338 }
  0xe3   : > { %v354_v62 = vpop.permute.xlu1 %353  ;;  %v408_v58 = vmul.f32 %v3679_v51, %v339_v18 }
  0xe4   : > { %v411_v22 = vmul.f32 %v3679_v51, %v354_v62 }
  0xe6   : > { %v511_v35 = vadd.f32 %v495_v26, %v411_v22  ;;  %v565_v36 = vpop.permute.xlu0 %564  ;;  %v652_v26 = vld [vmem:[#allocation2 + $0x18] sm:$0xff] }
  0xe7   : > { %v580_v0 = vpop.permute.xlu1 %579 }
  0xe8   : > { %v625_v2 = vadd.f32 %v580_v0, %v513_v63  ;;  %v490_v63 = vmul.f32 %v3676_v49, %v3674_v48 }
  0xea   : > { %v641_v5 = vmax.f32 %v625_v2, 0.0  ;;  %v324_v62 = vpop.permute.xlu0 %323 }
  0xeb   : > { %v349_v6 = vpop.permute.xlu1 %348 }
  0xec   : > { %2765 = vmatprep.subr.mxu0 %v641_v5  ;;  %v410_v13 = vmul.f32 %v3679_v51, %v349_v6 }
  0xed   : > { %2766 = vmatpush3.msra.mxu0 %v641_v5 }
  0xee   : > { %v510_v34 = vadd.f32 %v494_v19, %v410_v13  ;;  %v545_v8 = vpop.permute.xlu0 %544 }
  0xef   : > { %v575_v10 = vpop.permute.xlu1 %574 }
  0xf0   : > { %v624_v12 = vadd.f32 %v575_v10, %v512_v9  ;;  %v622_v40 = vadd.f32 %v565_v36, %v510_v34  ;;  %v405_v10 = vmul.f32 %v3679_v51, %v324_v62  ;;  %v654_v34 = vld [vmem:[#allocation2 + $0x28] sm:$0xff]  ;;  %v656_v36 = vld [vmem:[#allocation2 + $0x38] sm:$0xff] }
  0xf2   : > { %v640_v14 = vmax.f32 %v624_v12, 0.0  ;;  %v638_v46 = vmax.f32 %v622_v40, 0.0  ;;  %v659_v40 = vld [vmem:[#allocation2 + $0x50] sm:$0xff] }
  0xf4   : > { %v439_v23 = vpop.permute.xlu1 %438  ;;  %2767 = vmatprep.subr.mxu0 %v640_v14 }
  0xf5   : > { %2768 = vmatpush3.msra.mxu0 %v640_v14  ;;  %v493_v45 = vmul.f32 %v3676_v49, %v439_v23 }
  0xf7   : > { %v509_v53 = vadd.f32 %v493_v45, %v409_v52  ;;  %v663_v45 = vld [vmem:[#allocation2 + $0x70] sm:$0xff]  ;;  %v891_v52 = vld [vmem:[#allocation2 + $0x80] sm:$0xff] }
  0xf8   : > { %2839 = vmatprep.mubr.f32.mxu1 %v891_v52 }
  0xf9   : > { %v570_v37 = vpop.permute.xlu1 %569 }
  0xfa   : > { %v623_v38 = vadd.f32 %v570_v37, %v511_v35  ;;  %v655_v35 = vld [vmem:[#allocation2 + $0x30] sm:$0xff]  ;;  %v657_v37 = vld [vmem:[#allocation2 + $0x40] sm:$0xff] }
  0xfc   : > { %v639_v42 = vmax.f32 %v623_v38, 0.0  ;;  %v658_v38 = vld [vmem:[#allocation2 + $0x48] sm:$0xff] }
  0xfe   : > { %v435_v44 = vpop.permute.xlu1 %434  ;;  %2769 = vmatprep.subr.mxu0 %v639_v42 }
  0xff   : > { %2770 = vmatpush3.msra.mxu0 %v639_v42  ;;  %v492_v55 = vmul.f32 %v3676_v49, %v435_v44  ;;  %v660_v42 = vld [vmem:[#allocation2 + $0x58] sm:$0xff]  ;;  %v661_v44 = vld [vmem:[#allocation2 + $0x60] sm:$0xff] }
 0x100   : > { %2771 = vmatprep.subr.mxu0 %v638_v46 }
 0x101   : > { %2772 = vmatpush3.msra.mxu0 %v638_v46  ;;  %v508_v57 = vadd.f32 %v492_v55, %v408_v58  ;;  %v662_v46 = vld [vmem:[#allocation2 + $0x68] sm:$0xff] }
 0x103   : > { %v334_v50 = vpop.permute.xlu1 %333 }
 0x104   : > { %v407_v0 = vmul.f32 %v3679_v51, %v334_v50  ;;  %v664_v50 = vld [vmem:[#allocation2 + $0x78] sm:$0xff] }
 0x106   : > { %v507_v6 = vadd.f32 %v491_v3, %v407_v0 }
 0x107   : > { %v560_v43 = vpop.permute.xlu1 %559 }
 0x108   : > { %v621_v54 = vadd.f32 %v560_v43, %v509_v53  ;;  %v3357_v53 = vmov 2  }
 0x109   : > { %3204 = vset.pattern.permute.xlu1 %v3357_v53  ;;  %3205 = vset.pattern.permute.xlu0 %v3357_v53 }
 0x10a   : > { %v637_v56 = vmax.f32 %v621_v54, 0.0  ;;  %968 = vperm.xlu1 %3204, %v3493_v7   ;;  %964 = vperm.xlu0 %3205, %v3509_v11  }
 0x10b   : > { %v329_v39 = vpop.permute.xlu1 %328 }
 0x10c   : > { %2773 = vmatprep.subr.mxu0 %v637_v56  ;;  %v406_v41 = vmul.f32 %v3679_v51, %v329_v39  ;;  %v653_v51 = vld [vmem:[#allocation2 + $0x20] sm:$0xff] }
 0x10d   : > { %2774 = vmatpush3.msra.mxu0 %v637_v56 }
 0x10e   : > { %v506_v4 = vadd.f32 %v490_v63, %v406_v41  ;;  %960 = vperm.xlu1 %3204, %v3540_v16   ;;  %952 = vperm.xlu0 %3205, %v3545_v17  }
 0x10f   : > { %v555_v59 = vpop.permute.xlu1 %554 }
 0x110   : > { %v620_v60 = vadd.f32 %v555_v59, %v508_v57  ;;  %v618_v13 = vadd.f32 %v545_v8, %v506_v4  ;;  %v727_v59 = vpop.permute.xlu0 %726 }
 0x112   : > { %v636_v61 = vmax.f32 %v620_v60, 0.0  ;;  %v634_v22 = vmax.f32 %v618_v13, 0.0  ;;  %956 = vperm.xlu1 %3204, %v3534_v15   ;;  %944 = vperm.xlu0 %3205, %v3564_v21  }
 0x114   : > { %v423_v2 = vpop.permute.xlu1 %422  ;;  %2775 = vmatprep.subr.mxu0 %v636_v61  ;;  %v715_v63 = vpop.permute.xlu0 %714 }
 0x115   : > { %2776 = vmatpush3.msra.mxu0 %v636_v61  ;;  %v489_v5 = vmul.f32 %v3676_v49, %v423_v2  ;;  %v651_v49 = vld [vmem:[#allocation2 + $0x10] sm:$0xff] }
 0x116   : > { %948 = vperm.xlu1 %3204, %v3559_v20   ;;  %936 = vperm.xlu0 %3205, %v3600_v28  }
 0x117   : > { %v505_v48 = vadd.f32 %v489_v5, %v405_v10 }
 0x118   : > { %v707_v5 = vpop.permute.xlu0 %706 }
 0x119   : > { %v550_v9 = vpop.permute.xlu1 %549 }
 0x11a   : > { %v619_v12 = vadd.f32 %v550_v9, %v507_v6  ;;  %940 = vperm.xlu1 %3204, %v3585_v25   ;;  %928 = vperm.xlu0 %3205, %v3580_v24  }
 0x11c   : > { %v635_v14 = vmax.f32 %v619_v12, 0.0  ;;  %v699_v13 = vpop.permute.xlu0 %698 }
 0x11d   : > { %v540_v18 = vpop.permute.xlu1 %539 }
 0x11e   : > { %v617_v19 = vadd.f32 %v540_v18, %v505_v48  ;;  %2777 = vmatprep.subr.mxu0 %v635_v14  ;;  %932 = vperm.xlu1 %3204, %v3610_v29  }
 0x11f   : > { %2778 = vmatpush3.msra.mxu0 %v635_v14  ;;  %920 = vperm.xlu0 %3205, %v3638_v32  }
 0x120   : > { %v633_v23 = vmax.f32 %v617_v19, 0.0  ;;  %2779 = vmatprep.subr.mxu0 %v634_v22 }
 0x121   : > { %2780 = vmatpush3.msra.mxu0 %v634_v22 }
 0x122   : > { %2781 = vmatprep.subr.mxu0 %v633_v23  ;;  %924 = vperm.xlu1 %3204, %v3624_v30   ;;  %v723_v58 = vpop.permute.xlu1 %722 }
 0x123   : > { %2782 = vmatpush3.msra.mxu0 %v633_v23  ;;  %912 = vperm.xlu0 %3205, %v3595_v27  }
 0x124   : > { %2784 = vmatmul.mubr.f32.vlgmr.msra.gmra.mxu0 %v650_v47 }
 0x125   : > { %2786 = vmatprep.mubr.f32.mxu0 %v651_v49 }
 0x126   : > { %916 = vperm.xlu1 %3204, %v3631_v31   ;;  %v719_v61 = vpop.permute.xlu1 %718 }
 0x128   : > { %2787 = vmatmul.mubr.f32.gmra.mxu0 %v652_v26 }
 0x129   : > { %2789 = vmatprep.mubr.f32.mxu0 %v653_v51  ;;  %v691_v51 = vpop.permute.xlu0 %690 }
 0x12a   : > { %908 = vperm.xlu1 %3204, %v3643_v33   ;;  %v711_v3 = vpop.permute.xlu1 %710 }
 0x12c   : > { %2790 = vmatmul.mubr.f32.gmra.mxu0 %v654_v34 }
 0x12d   : > { %2792 = vmatprep.mubr.f32.mxu0 %v655_v35 }
 0x12e   : > { %v703_v9 = vpop.permute.xlu1 %702 }
 0x130   : > { %2793 = vmatmul.mubr.f32.gmra.mxu0 %v656_v36 }
 0x131   : > { %2795 = vmatprep.mubr.f32.mxu0 %v657_v37 }
 0x132   : > { %v695_v47 = vpop.permute.xlu1 %694 }
 0x134   : > { %2796 = vmatmul.mubr.f32.gmra.mxu0 %v658_v38 }
 0x135   : > { %2798 = vmatprep.mubr.f32.mxu0 %v659_v40 }
 0x136   : > { %v687_v38 = vpop.permute.xlu1 %686 }
 0x138   : > { %2799 = vmatmul.mubr.f32.gmra.mxu0 %v660_v42 }
 0x139   : > { %2801 = vmatprep.mubr.f32.mxu0 %v661_v44  ;;  %v683_v44 = vpop.permute.xlu0 %682 }
 0x13c   : > { %2802 = vmatmul.mubr.f32.gmra.mxu0 %v662_v46 }
 0x13d   : > { %2804 = vmatprep.mubr.f32.mxu0 %v663_v45 }
 0x140   : > { %2805 = vmatmul.mubr.f32.gmra.mxu0 %v664_v50 }
 0x1e4   : > { %v3737_v43 = vpop.f32.mrf.mxu0 }
 0x1e6   : > { %v3739_v54 = vpop.f32.mrf.mxu0 }
 0x1e8   : > { %v3741_v55 = vpop.f32.mrf.mxu0 }
 0x1ea   : > { %v3743_v56 = vpop.f32.mrf.mxu0 }
 0x1ec   : > { %v2791_v39 = vpop.f32.mrf.mxu0 }
 0x1ee   : > { %v815_v57 = vpop.f32.mrf.mxu0 }
 0x1f0   : > { %v2794_v60 = vpop.f32.mrf.mxu0 }
 0x1f1   : > { %v831_v46 = vadd.f32 %v2794_v60, %v695_v47  ;;  %v904_v47 = vld [vmem:[#allocation2 + $0xe8] sm:$0xff] }
 0x1f2   : > { %v825_v41 = vpop.f32.mrf.mxu0 }
 0x1f3   : > { %v826_v50 = vadd.f32 %v825_v41, %v691_v51  ;;  %v1133_v51 = vld [vmem:[#allocation2 + $0x100] sm:$0xff] }
 0x1f4   : > { %v2797_v62 = vpop.f32.mrf.mxu0  ;;  %2895 = vmatprep.mubr.f32.mxu0 %v1133_v51 }
 0x1f5   : > { %v841_v36 = vadd.f32 %v2797_v62, %v703_v9  ;;  %v675_v62 = vpop.permute.xlu0 %674 }
 0x1f6   : > { %v835_v0 = vpop.f32.mrf.mxu0  ;;  %v806_v41 = vadd.f32 %v3743_v56, %v675_v62  ;;  %v892_v56 = vld [vmem:[#allocation2 + $0x88] sm:$0xff] }
 0x1f7   : > { %v836_v40 = vadd.f32 %v835_v0, %v699_v13  ;;  %v883_v45 = vmax.f32 %v841_v36, 0.0  ;;  %v880_v0 = vmax.f32 %v826_v50, 0.0  ;;  %v897_v13 = vld [vmem:[#allocation2 + $0xb0] sm:$0xff] }
 0x1f8   : > { %v2800_v2 = vpop.f32.mrf.mxu0 }
 0x1f9   : > { %v851_v49 = vadd.f32 %v2800_v2, %v711_v3  ;;  %v882_v52 = vmax.f32 %v836_v40, 0.0 }
 0x1fa   : > { %v845_v4 = vpop.f32.mrf.mxu0 }
 0x1fb   : > { %v846_v34 = vadd.f32 %v845_v4, %v707_v5  ;;  %v885_v37 = vmax.f32 %v851_v49, 0.0  ;;  %v667_v5 = vpop.permute.xlu0 %666  ;;  %v905_v49 = vld [vmem:[#allocation2 + $0xf0] sm:$0xff] }
 0x1fc   : > { %v2803_v6 = vpop.f32.mrf.mxu0 }
 0x1fd   : > { %v861_v48 = vadd.f32 %v2803_v6, %v719_v61  ;;  %v884_v42 = vmax.f32 %v846_v34, 0.0  ;;  %v881_v61 = vmax.f32 %v831_v46, 0.0  ;;  %v3358_v34 = vmov 3  }
 0x1fe   : > { %v855_v8 = vpop.f32.mrf.mxu0  ;;  %3207 = vset.pattern.permute.xlu1 %v3358_v34  ;;  %3206 = vset.pattern.permute.xlu0 %v3358_v34 }
 0x1ff   : > { %v856_v22 = vadd.f32 %v855_v8, %v715_v63  ;;  %v887_v26 = vmax.f32 %v861_v48, 0.0  ;;  %v816_v63 = vadd.f32 %v815_v57, %v683_v44  ;;  %v796_v57 = vadd.f32 %v3739_v54, %v667_v5  ;;  %v896_v54 = vld [vmem:[#allocation2 + $0xa8] sm:$0xff]  ;;  %v899_v48 = vld [vmem:[#allocation2 + $0xc0] sm:$0xff]  ;;  %1206 = vperm.xlu1 %3207, %v3509_v11   ;;  %1210 = vperm.xlu0 %3206, %v3493_v7  }
 0x200   : > { %v2806_v10 = vpop.f32.mrf.mxu0  ;;  %v876_v8 = vmax.f32 %v806_v41, 0.0 }
 0x201   : > { %v871_v12 = vadd.f32 %v2806_v10, %v727_v59  ;;  %v886_v35 = vmax.f32 %v856_v22, 0.0  ;;  %v821_v59 = vadd.f32 %v2791_v39, %v687_v38  ;;  %v878_v4 = vmax.f32 %v816_v63, 0.0  ;;  %v893_v10 = vld [vmem:[#allocation2 + $0x90] sm:$0xff]  ;;  %v902_v22 = vld [vmem:[#allocation2 + $0xd8] sm:$0xff] }
 0x202   : > { %v865_v14 = vpop.f32.mrf.mxu0  ;;  %v874_v9 = vmax.f32 %v796_v57, 0.0 }
 0x203   : > { %v889_v18 = vmax.f32 %v871_v12, 0.0  ;;  %v866_v19 = vadd.f32 %v865_v14, %v723_v58  ;;  %v679_v58 = vpop.permute.xlu1 %678  ;;  %v879_v60 = vmax.f32 %v821_v59, 0.0  ;;  %v895_v12 = vld [vmem:[#allocation2 + $0xa0] sm:$0xff]  ;;  %v898_v14 = vld [vmem:[#allocation2 + $0xb8] sm:$0xff]  ;;  %1202 = vperm.xlu1 %3207, %v3540_v16   ;;  %1198 = vperm.xlu0 %3206, %v3534_v15  }
 0x204   : > { %v811_v2 = vadd.f32 %v3741_v55, %v679_v58 }
 0x205   : > { %v888_v23 = vmax.f32 %v866_v19, 0.0  ;;  %2807 = vmatprep.subr.mxu1 %v889_v18  ;;  %v901_v19 = vld [vmem:[#allocation2 + $0xd0] sm:$0xff] }
 0x206   : > { %2808 = vmatpush3.msra.mxu1 %v889_v18  ;;  %v877_v6 = vmax.f32 %v811_v2, 0.0  ;;  %v900_v18 = vld [vmem:[#allocation2 + $0xc8] sm:$0xff] }
 0x207   : > { %2809 = vmatprep.subr.mxu1 %v888_v23  ;;  %v671_v3 = vpop.permute.xlu1 %670  ;;  %1194 = vperm.xlu1 %3207, %v3545_v17  }
 0x208   : > { %2810 = vmatpush3.msra.mxu1 %v888_v23  ;;  %v801_v39 = vadd.f32 %v3737_v43, %v671_v3  ;;  %v894_v43 = vld [vmem:[#allocation2 + $0x98] sm:$0xff]  ;;  %v903_v23 = vld [vmem:[#allocation2 + $0xe0] sm:$0xff]  ;;  %1190 = vperm.xlu0 %3206, %v3559_v20  }
 0x209   : > { %2811 = vmatprep.subr.mxu1 %v887_v26 }
 0x20a   : > { %2812 = vmatpush3.msra.mxu1 %v887_v26  ;;  %v875_v55 = vmax.f32 %v801_v39, 0.0  ;;  %v906_v26 = vld [vmem:[#allocation2 + $0xf8] sm:$0xff] }
 0x20b   : > { %2813 = vmatprep.subr.mxu1 %v886_v35  ;;  %1186 = vperm.xlu1 %3207, %v3564_v21   ;;  %v969_v16 = vpop.permute.xlu1 %968 }
 0x20c   : > { %2814 = vmatpush3.msra.mxu1 %v886_v35  ;;  %1182 = vperm.xlu0 %3206, %v3585_v25  }
 0x20d   : > { %2815 = vmatprep.subr.mxu1 %v885_v37 }
 0x20e   : > { %2816 = vmatpush3.msra.mxu1 %v885_v37 }
 0x20f   : > { %2817 = vmatprep.subr.mxu1 %v884_v42  ;;  %1178 = vperm.xlu1 %3207, %v3600_v28   ;;  %v965_v28 = vpop.permute.xlu0 %964 }
 0x210   : > { %2818 = vmatpush3.msra.mxu1 %v884_v42  ;;  %1174 = vperm.xlu0 %3206, %v3610_v29  }
 0x211   : > { %2819 = vmatprep.subr.mxu1 %v883_v45 }
 0x212   : > { %2820 = vmatpush3.msra.mxu1 %v883_v45 }
 0x213   : > { %2821 = vmatprep.subr.mxu1 %v882_v52  ;;  %1170 = vperm.xlu1 %3207, %v3580_v24   ;;  %v961_v24 = vpop.permute.xlu1 %960 }
 0x214   : > { %2822 = vmatpush3.msra.mxu1 %v882_v52  ;;  %1166 = vperm.xlu0 %3206, %v3624_v30  }
 0x215   : > { %2823 = vmatprep.subr.mxu1 %v881_v61 }
 0x216   : > { %2824 = vmatpush3.msra.mxu1 %v881_v61 }
 0x217   : > { %2825 = vmatprep.subr.mxu1 %v880_v0  ;;  %1162 = vperm.xlu1 %3207, %v3638_v32   ;;  %v957_v30 = vpop.permute.xlu1 %956 }
 0x218   : > { %2826 = vmatpush3.msra.mxu1 %v880_v0  ;;  %1158 = vperm.xlu0 %3206, %v3631_v31  }
 0x219   : > { %2827 = vmatprep.subr.mxu1 %v879_v60 }
 0x21a   : > { %2828 = vmatpush3.msra.mxu1 %v879_v60 }
 0x21b   : > { %2829 = vmatprep.subr.mxu1 %v878_v4  ;;  %1154 = vperm.xlu1 %3207, %v3595_v27   ;;  %v949_v36 = vpop.permute.xlu1 %948 }
 0x21c   : > { %2830 = vmatpush3.msra.mxu1 %v878_v4  ;;  %1150 = vperm.xlu0 %3206, %v3643_v33   ;;  %v953_v33 = vpop.permute.xlu0 %952 }
 0x21d   : > { %2831 = vmatprep.subr.mxu1 %v877_v6 }
 0x21e   : > { %2832 = vmatpush3.msra.mxu1 %v877_v6 }
 0x21f   : > { %2833 = vmatprep.subr.mxu1 %v876_v8  ;;  %3208 = vset.pattern.permute.xlu1 %v3357_v53  ;;  %v941_v46 = vpop.permute.xlu1 %940 }
 0x220   : > { %2834 = vmatpush3.msra.mxu1 %v876_v8  ;;  %3209 = vset.pattern.permute.xlu0 %v3357_v53  ;;  %v945_v40 = vpop.permute.xlu0 %944 }
 0x221   : > { %2835 = vmatprep.subr.mxu1 %v875_v55 }
 0x222   : > { %2836 = vmatpush3.msra.mxu1 %v875_v55 }
 0x223   : > { %2837 = vmatprep.subr.mxu1 %v874_v9  ;;  %v933_v2 = vpop.permute.xlu1 %932 }
 0x224   : > { %2838 = vmatpush3.msra.mxu1 %v874_v9  ;;  %v937_v62 = vpop.permute.xlu0 %936 }
 0x225   : > { %2840 = vmatmul.mubr.f32.vlgmr.msra.gmra.mxu1 %v892_v56 }
 0x226   : > { %2842 = vmatprep.mubr.f32.mxu1 %v893_v10 }
 0x227   : > { %v925_v57 = vpop.permute.xlu1 %924 }
 0x228   : > { %v929_v5 = vpop.permute.xlu0 %928 }
 0x229   : > { %2843 = vmatmul.mubr.f32.gmra.mxu1 %v894_v43 }
 0x22a   : > { %2845 = vmatprep.mubr.f32.mxu1 %v895_v12 }
 0x22c   : > { %v921_v10 = vpop.permute.xlu0 %920 }
 0x22d   : > { %2846 = vmatmul.mubr.f32.gmra.mxu1 %v896_v54  ;;  %v917_v54 = vpop.permute.xlu1 %916 }
 0x22e   : > { %2848 = vmatprep.mubr.f32.mxu1 %v897_v13 }
 0x231   : > { %2849 = vmatmul.mubr.f32.gmra.mxu1 %v898_v14 }
 0x232   : > { %2851 = vmatprep.mubr.f32.mxu1 %v899_v48 }
 0x235   : > { %2852 = vmatmul.mubr.f32.gmra.mxu1 %v900_v18 }
 0x236   : > { %2854 = vmatprep.mubr.f32.mxu1 %v901_v19  ;;  %v913_v19 = vpop.permute.xlu0 %912 }
 0x239   : > { %2855 = vmatmul.mubr.f32.gmra.mxu1 %v902_v22 }
 0x23a   : > { %2857 = vmatprep.mubr.f32.mxu1 %v903_v23 }
 0x23d   : > { %2858 = vmatmul.mubr.f32.gmra.mxu1 %v904_v47  ;;  %v909_v47 = vpop.permute.xlu1 %908 }
 0x23e   : > { %2860 = vmatprep.mubr.f32.mxu1 %v905_v49 }
 0x241   : > { %2861 = vmatmul.mubr.f32.gmra.mxu1 %v906_v26 }
 0x2e5   : > { %v3767_v7 = vpop.f32.mrf.mxu1 }
 0x2e6   : > { %v1043_v49 = vadd.f32 %v3767_v7, %v913_v19  ;;  %v1136_v7 = vld [vmem:[#allocation2 + $0x118] sm:$0xff] }
 0x2e7   : > { %v3769_v11 = vpop.f32.mrf.mxu1 }
 0x2e8   : > { %v1038_v51 = vadd.f32 %v3769_v11, %v909_v47  ;;  %v1138_v11 = vld [vmem:[#allocation2 + $0x128] sm:$0xff] }
 0x2e9   : > { %v3771_v15 = vpop.f32.mrf.mxu1 }
 0x2ea   : > { %v1053_v48 = vadd.f32 %v3771_v15, %v921_v10  ;;  %v1117_v15 = vmax.f32 %v1043_v49, 0.0 }
 0x2eb   : > { %v3773_v17 = vpop.f32.mrf.mxu1 }
 0x2ec   : > { %v1048_v22 = vadd.f32 %v3773_v17, %v917_v54  ;;  %v1119_v26 = vmax.f32 %v1053_v48, 0.0  ;;  %v1134_v17 = vld [vmem:[#allocation2 + $0x108] sm:$0xff] }
 0x2ed   : > { %v2847_v20 = vpop.f32.mrf.mxu1 }
 0x2ee   : > { %v1063_v43 = vadd.f32 %v2847_v20, %v929_v5  ;;  %v1118_v34 = vmax.f32 %v1048_v22, 0.0  ;;  %v1135_v20 = vld [vmem:[#allocation2 + $0x110] sm:$0xff] }
 0x2ef   : > { %v1057_v21 = vpop.f32.mrf.mxu1 }
 0x2f0   : > { %v1058_v13 = vadd.f32 %v1057_v21, %v925_v57  ;;  %v1121_v18 = vmax.f32 %v1063_v43, 0.0  ;;  %v1137_v21 = vld [vmem:[#allocation2 + $0x120] sm:$0xff] }
 0x2f1   : > { %v2850_v25 = vpop.f32.mrf.mxu1 }
 0x2f2   : > { %v1073_v8 = vadd.f32 %v2850_v25, %v937_v62  ;;  %v1120_v23 = vmax.f32 %v1058_v13, 0.0  ;;  %v1140_v25 = vld [vmem:[#allocation2 + $0x138] sm:$0xff] }
 0x2f3   : > { %v1067_v27 = vpop.f32.mrf.mxu1 }
 0x2f4   : > { %v1068_v9 = vadd.f32 %v1067_v27, %v933_v2  ;;  %v1123_v12 = vmax.f32 %v1073_v8, 0.0  ;;  %v1141_v27 = vld [vmem:[#allocation2 + $0x140] sm:$0xff] }
 0x2f5   : > { %v2853_v29 = vpop.f32.mrf.mxu1 }
 0x2f6   : > { %v1083_v41 = vadd.f32 %v2853_v29, %v945_v40  ;;  %v1122_v14 = vmax.f32 %v1068_v9, 0.0  ;;  %v1143_v29 = vld [vmem:[#allocation2 + $0x150] sm:$0xff] }
 0x2f7   : > { %v1077_v31 = vpop.f32.mrf.mxu1 }
 0x2f8   : > { %v1078_v39 = vadd.f32 %v1077_v31, %v941_v46  ;;  %v1125_v55 = vmax.f32 %v1083_v41, 0.0  ;;  %v1145_v31 = vld [vmem:[#allocation2 + $0x160] sm:$0xff]  ;;  %v1207_v46 = vpop.permute.xlu1 %1206 }
 0x2f9   : > { %v2856_v32 = vpop.f32.mrf.mxu1 }
 0x2fa   : > { %v1093_v63 = vadd.f32 %v2856_v32, %v953_v33  ;;  %v1124_v56 = vmax.f32 %v1078_v39, 0.0  ;;  %v1146_v32 = vld [vmem:[#allocation2 + $0x168] sm:$0xff]  ;;  %v1147_v33 = vld [vmem:[#allocation2 + $0x170] sm:$0xff] }
 0x2fb   : > { %v1087_v35 = vpop.f32.mrf.mxu1 }
 0x2fc   : > { %v1088_v60 = vadd.f32 %v1087_v35, %v949_v36  ;;  %v1127_v4 = vmax.f32 %v1093_v63, 0.0  ;;  %v1148_v35 = vld [vmem:[#allocation2 + $0x178] sm:$0xff] }
 0x2fd   : > { %v2859_v37 = vpop.f32.mrf.mxu1 }
 0x2fe   : > { %v1103_v50 = vadd.f32 %v2859_v37, %v961_v24  ;;  %v1126_v6 = vmax.f32 %v1088_v60, 0.0  ;;  %v1139_v24 = vld [vmem:[#allocation2 + $0x130] sm:$0xff] }
 0x2ff   : > { %v1097_v38 = vpop.f32.mrf.mxu1 }
 0x300   : > { %v1098_v59 = vadd.f32 %v1097_v38, %v957_v30  ;;  %v1129_v0 = vmax.f32 %v1103_v50, 0.0  ;;  %v1144_v30 = vld [vmem:[#allocation2 + $0x158] sm:$0xff] }
 0x301   : > { %v2862_v42 = vpop.f32.mrf.mxu1 }
 0x302   : > { %v1113_v44 = vadd.f32 %v2862_v42, %v969_v16  ;;  %v1128_v3 = vmax.f32 %v1098_v59, 0.0  ;;  %v1116_v16 = vmax.f32 %v1038_v51, 0.0  ;;  %v1211_v42 = vpop.permute.xlu0 %1210  ;;  %v1203_v59 = vpop.permute.xlu1 %1202 }
 0x303   : > { %v1107_v45 = vpop.f32.mrf.mxu1 }
 0x304   : > { %v1131_v52 = vmax.f32 %v1113_v44, 0.0  ;;  %v1108_v58 = vadd.f32 %v1107_v45, %v965_v28  ;;  %v1142_v28 = vld [vmem:[#allocation2 + $0x148] sm:$0xff] }
 0x306   : > { %v1130_v61 = vmax.f32 %v1108_v58, 0.0  ;;  %2863 = vmatprep.subr.mxu0 %v1131_v52  ;;  %v1195_v2 = vpop.permute.xlu1 %1194 }
 0x307   : > { %2864 = vmatpush3.msra.mxu0 %v1131_v52  ;;  %v1199_v52 = vpop.permute.xlu0 %1198 }
 0x308   : > { %2865 = vmatprep.subr.mxu0 %v1130_v61 }
 0x309   : > { %2866 = vmatpush3.msra.mxu0 %v1130_v61 }
 0x30a   : > { %2867 = vmatprep.subr.mxu0 %v1129_v0  ;;  %v1187_v5 = vpop.permute.xlu1 %1186 }
 0x30b   : > { %2868 = vmatpush3.msra.mxu0 %v1129_v0  ;;  %v1191_v63 = vpop.permute.xlu0 %1190 }
 0x30c   : > { %2869 = vmatprep.subr.mxu0 %v1128_v3 }
 0x30d   : > { %2870 = vmatpush3.msra.mxu0 %v1128_v3 }
 0x30e   : > { %2871 = vmatprep.subr.mxu0 %v1127_v4 }
 0x30f   : > { %2872 = vmatpush3.msra.mxu0 %v1127_v4  ;;  %v1183_v41 = vpop.permute.xlu0 %1182 }
 0x310   : > { %2873 = vmatprep.subr.mxu0 %v1126_v6 }
 0x311   : > { %2874 = vmatpush3.msra.mxu0 %v1126_v6 }
 0x312   : > { %2875 = vmatprep.subr.mxu0 %v1125_v55 }
 0x313   : > { %2876 = vmatpush3.msra.mxu0 %v1125_v55  ;;  %v1175_v10 = vpop.permute.xlu0 %1174 }
 0x314   : > { %2877 = vmatprep.subr.mxu0 %v1124_v56 }
 0x315   : > { %2878 = vmatpush3.msra.mxu0 %v1124_v56 }
 0x316   : > { %2879 = vmatprep.subr.mxu0 %v1123_v12 }
 0x317   : > { %2880 = vmatpush3.msra.mxu0 %v1123_v12  ;;  %v1167_v49 = vpop.permute.xlu0 %1166 }
 0x318   : > { %2881 = vmatprep.subr.mxu0 %v1122_v14 }
 0x319   : > { %2882 = vmatpush3.msra.mxu0 %v1122_v14  ;;  %v1179_v14 = vpop.permute.xlu1 %1178 }
 0x31a   : > { %2883 = vmatprep.subr.mxu0 %v1121_v18 }
 0x31b   : > { %2884 = vmatpush3.msra.mxu0 %v1121_v18 }
 0x31c   : > { %2885 = vmatprep.subr.mxu0 %v1120_v23 }
 0x31d   : > { %2886 = vmatpush3.msra.mxu0 %v1120_v23 }
 0x31e   : > { %2887 = vmatprep.subr.mxu0 %v1119_v26 }
 0x31f   : > { %2888 = vmatpush3.msra.mxu0 %v1119_v26 }
 0x320   : > { %2889 = vmatprep.subr.mxu0 %v1118_v34 }
 0x321   : > { %2890 = vmatpush3.msra.mxu0 %v1118_v34 }
 0x322   : > { %2891 = vmatprep.subr.mxu0 %v1117_v15 }
 0x323   : > { %2892 = vmatpush3.msra.mxu0 %v1117_v15  ;;  %v1171_v15 = vpop.permute.xlu1 %1170 }
 0x324   : > { %2893 = vmatprep.subr.mxu0 %v1116_v16 }
 0x325   : > { %2894 = vmatpush3.msra.mxu0 %v1116_v16 }
 0x326   : > { %2896 = vmatmul.mubr.f32.vlgmr.msra.gmra.mxu0 %v1134_v17 }
 0x327   : > { %2898 = vmatprep.mubr.f32.mxu0 %v1135_v20 }
 0x32a   : > { %2899 = vmatmul.mubr.f32.gmra.mxu0 %v1136_v7 }
 0x32b   : > { %2901 = vmatprep.mubr.f32.mxu0 %v1137_v21 }
 0x32e   : > { %2902 = vmatmul.mubr.f32.gmra.mxu0 %v1138_v11 }
 0x32f   : > { %2904 = vmatprep.mubr.f32.mxu0 %v1139_v24  ;;  %v1159_v24 = vpop.permute.xlu0 %1158 }
 0x332   : > { %2905 = vmatmul.mubr.f32.gmra.mxu0 %v1140_v25 }
 0x333   : > { %2907 = vmatprep.mubr.f32.mxu0 %v1141_v27 }
 0x336   : > { %2908 = vmatmul.mubr.f32.gmra.mxu0 %v1142_v28 }
 0x337   : > { %2910 = vmatprep.mubr.f32.mxu0 %v1143_v29  ;;  %v1163_v29 = vpop.permute.xlu1 %1162 }
 0x33a   : > { %2911 = vmatmul.mubr.f32.gmra.mxu0 %v1144_v30 }
 0x33b   : > { %2913 = vmatprep.mubr.f32.mxu0 %v1145_v31 }
 0x33e   : > { %2914 = vmatmul.mubr.f32.gmra.mxu0 %v1146_v32 }
 0x33f   : > { %2916 = vmatprep.mubr.f32.mxu0 %v1147_v33 }
 0x342   : > { %2917 = vmatmul.mubr.f32.gmra.mxu0 %v1148_v35 }
 0x3e6   : > { %v3779_v36 = vpop.f32.mrf.mxu0 }
 0x3e8   : > { %v3781_v37 = vpop.f32.mrf.mxu0 }
 0x3ea   : > { %v3783_v38 = vpop.f32.mrf.mxu0 }
 0x3ec   : > { %v3785_v40 = vpop.f32.mrf.mxu0 }
 0x3ed   : > { %v1290_v33 = vadd.f32 %v3785_v40, %v1159_v24 }
 0x3ee   : > { %v2903_v44 = vpop.f32.mrf.mxu0 }
 0x3ef   : > { %v1305_v30 = vadd.f32 %v2903_v44, %v1171_v15 }
 0x3f0   : > { %v1299_v45 = vpop.f32.mrf.mxu0 }
 0x3f1   : > { %v1300_v25 = vadd.f32 %v1299_v45, %v1167_v49  ;;  %v1363_v45 = vmax.f32 %v1305_v30, 0.0  ;;  %v3250_v49 = vld [vmem:[%s4129_s2 + $0x48] sm:$0xff] }
 0x3f2   : > { %v2906_v50 = vpop.f32.mrf.mxu0 }
 0x3f3   : > { %v1315_v7 = vadd.f32 %v2906_v50, %v1179_v14  ;;  %v1362_v35 = vmax.f32 %v1300_v25, 0.0  ;;  %v1295_v50 = vadd.f32 %v3783_v38, %v1163_v29  ;;  %v3915_v14 = vld [vmem:[%s4132_s5] sm:$0xff] }
 0x3f4   : > { %v1309_v58 = vpop.f32.mrf.mxu0 }
 0x3f5   : > { %v1310_v16 = vadd.f32 %v1309_v58, %v1175_v10  ;;  %v1365_v31 = vmax.f32 %v1315_v7, 0.0  ;;  %v1155_v58 = vpop.permute.xlu1 %1154  ;;  %v3880_v10 = vld [vmem:[%s4132_s5 + $0x28] sm:$0xff] }
 0x3f6   : > { %v2909_v61 = vpop.f32.mrf.mxu0  ;;  %v1285_v40 = vadd.f32 %v3779_v36, %v1155_v58  ;;  %v3810_v36 = vld [vmem:[%s4132_s5 + $0x70] sm:$0xff] }
 0x3f7   : > { %v1325_v26 = vadd.f32 %v2909_v61, %v1187_v5  ;;  %v1364_v27 = vmax.f32 %v1310_v16, 0.0  ;;  %v1387_v61 = vsel %vm1374_vm0, %v1362_v35, 0.0  ;;  %v3824_v5 = vld [vmem:[%s4132_s5 + $0x68] sm:$0xff] }
 0x3f8   : > { %v1319_v62 = vpop.f32.mrf.mxu0 }
 0x3f9   : > { %v1320_v22 = vadd.f32 %v1319_v62, %v1183_v41  ;;  %v1367_v21 = vmax.f32 %v1325_v26, 0.0  ;;  %v1361_v62 = vmax.f32 %v1295_v50, 0.0  ;;  %v1442_v41 = vld [vmem:[#allocation2 + $0x180] sm:$0xff]  ;;  %v3251_v26 = vld [vmem:[%s4129_s2 + $0x38] sm:$0xff] }
 0x3fa   : > { %v2912_v0 = vpop.f32.mrf.mxu0  ;;  %2951 = vmatprep.mubr.f32.mxu1 %v1442_v41  ;;  %v1447_v41 = vld [vmem:[#allocation2 + $0x1a8] sm:$0xff] }
 0x3fb   : > { %v1335_v48 = vadd.f32 %v2912_v0, %v1195_v2  ;;  %v1366_v17 = vmax.f32 %v1320_v22, 0.0  ;;  %v1402_v32 = vsel %vm1374_vm0, %v1367_v21, 0.0  ;;  %v1359_v2 = vmax.f32 %v1285_v40, 0.0  ;;  %v3247_v22 = vld [vmem:[%s4129_s2 + $0x58] sm:$0xff] }
 0x3fc   : > { %v1329_v60 = vpop.f32.mrf.mxu0 }
 0x3fd   : > { %v1330_v43 = vadd.f32 %v1329_v60, %v1191_v63  ;;  %v1369_v51 = vmax.f32 %v1335_v48, 0.0  ;;  %v1399_v28 = vsel %vm1374_vm0, %v1366_v17, 0.0  ;;  %v1390_v63 = vsel %vm1374_vm0, %v1363_v45, 0.0  ;;  %v3244_v48 = vld [vmem:[%s4129_s2 + $0x78] sm:$0xff] }
 0x3fe   : > { %v2915_v3 = vpop.f32.mrf.mxu0  ;;  %v1384_v60 = vsel %vm1374_vm0, %v1361_v62, 0.0 }
 0x3ff   : > { %v1345_v55 = vadd.f32 %v2915_v3, %v1203_v59  ;;  %v1368_v23 = vmax.f32 %v1330_v43, 0.0  ;;  %v1408_v11 = vsel %vm1374_vm0, %v1369_v51, 0.0  ;;  %v1360_v59 = vmax.f32 %v1290_v33, 0.0  ;;  %v3887_v43 = vld [vmem:[%s4132_s5 + $0x20] sm:$0xff]  ;;  %v3252_v51 = vld [vmem:[%s4129_s2 + $0x30] sm:$0xff] }
 0x400   : > { %v1339_v4 = vpop.f32.mrf.mxu0  ;;  %v1378_v3 = vsel %vm1374_vm0, %v1359_v2, 0.0  ;;  %v1443_v2 = vld [vmem:[#allocation2 + $0x188] sm:$0xff] }
 0x401   : > { %v1340_v6 = vadd.f32 %v1339_v4, %v1199_v52  ;;  %v1371_v18 = vmax.f32 %v1345_v55, 0.0  ;;  %v1405_v20 = vsel %vm1374_vm0, %v1368_v23, 0.0  ;;  %v1396_v52 = vsel %vm1374_vm0, %v1365_v31, 0.0  ;;  %v3817_v4 = vld [vmem:[%s4132_s5 + $0x78] sm:$0xff]  ;;  %v3859_v55 = vld [vmem:[%s4132_s5 + $0x40] sm:$0xff] }
 0x402   : > { %v2918_v39 = vpop.f32.mrf.mxu0  ;;  %v1381_v38 = vsel %vm1374_vm0, %v1360_v59, 0.0  ;;  %v3248_v23 = vld [vmem:[%s4129_s2 + $0x60] sm:$0xff] }
 0x403   : > { %v1355_v57 = vadd.f32 %v2918_v39, %v1211_v42  ;;  %v1370_v12 = vmax.f32 %v1340_v6, 0.0  ;;  %v1414_v34 = vsel %vm1374_vm0, %v1371_v18, 0.0  ;;  %v1393_v42 = vsel %vm1374_vm0, %v1364_v27, 0.0  ;;  %v3831_v39 = vld [vmem:[%s4132_s5 + $0x60] sm:$0xff]  ;;  %v3838_v6 = vld [vmem:[%s4132_s5 + $0x58] sm:$0xff]  ;;  %v3245_v18 = vld [vmem:[%s4129_s2 + $0x70] sm:$0xff] }
 0x404   : > { %v1349_v8 = vpop.f32.mrf.mxu0 }
 0x405   : > { %v1373_v9 = vmax.f32 %v1355_v57, 0.0  ;;  %v1350_v56 = vadd.f32 %v1349_v8, %v1207_v46  ;;  %v1411_v47 = vsel %vm1374_vm0, %v1370_v12, 0.0  ;;  %v1151_v46 = vpop.permute.xlu0 %1150  ;;  %v3845_v57 = vld [vmem:[%s4132_s5 + $0x50] sm:$0xff]  ;;  %v3852_v8 = vld [vmem:[%s4132_s5 + $0x48] sm:$0xff]  ;;  %v3894_v12 = vld [vmem:[%s4132_s5 + $0x18] sm:$0xff] }
 0x406   : > { %v1280_v44 = vadd.f32 %v3781_v37, %v1151_v46 }
 0x407   : > { %v1372_v54 = vmax.f32 %v1350_v56, 0.0  ;;  %v1420_v13 = vsel %vm1374_vm0, %v1373_v9, 0.0  ;;  %v3866_v9 = vld [vmem:[%s4132_s5 + $0x38] sm:$0xff]  ;;  %v3873_v56 = vld [vmem:[%s4132_s5 + $0x30] sm:$0xff] }
 0x408   : > { %1421 = vadd.xlane.f32.xlu1 %v1420_v13  ;;  %v1358_v0 = vmax.f32 %v1280_v44, 0.0  ;;  %v3908_v13 = vld [vmem:[%s4132_s5 + $0x8] sm:$0xff] }
 0x409   : > { %v1417_v19 = vsel %vm1374_vm0, %v1372_v54, 0.0  ;;  %v3901_v54 = vld [vmem:[%s4132_s5 + $0x10] sm:$0xff] }
 0x40a   : > { %1418 = vadd.xlane.f32.xlu0 %v1417_v19  ;;  %v1375_v37 = vsel %vm1374_vm0, %v1358_v0, 0.0  ;;  %v3246_v19 = vld [vmem:[%s4129_s2 + $0x68] sm:$0xff] }
 0x40c   : > { %1412 = vadd.xlane.f32.xlu1 %v1411_v47  ;;  %v3249_v47 = vld [vmem:[%s4129_s2 + $0x50] sm:$0xff] }
 0x40e   : > { %1415 = vadd.xlane.f32.xlu0 %v1414_v34 }
 0x410   : > { %1406 = vadd.xlane.f32.xlu1 %v1405_v20 }
 0x412   : > { %1409 = vadd.xlane.f32.xlu0 %v1408_v11 }
 0x414   : > { %1400 = vadd.xlane.f32.xlu1 %v1399_v28 }
 0x416   : > { %1403 = vadd.xlane.f32.xlu0 %v1402_v32 }
 0x418   : > { %1394 = vadd.xlane.f32.xlu1 %v1393_v42 }
 0x41a   : > { %1397 = vadd.xlane.f32.xlu0 %v1396_v52 }
 0x41c   : > { %1388 = vadd.xlane.f32.xlu1 %v1387_v61 }
 0x41e   : > { %1391 = vadd.xlane.f32.xlu0 %v1390_v63 }
 0x420   : > { %1382 = vadd.xlane.f32.xlu1 %v1381_v38 }
 0x422   : > { %1385 = vadd.xlane.f32.xlu0 %v1384_v60  ;;  %v1444_v60 = vld [vmem:[#allocation2 + $0x190] sm:$0xff] }
 0x424   : > { %1376 = vadd.xlane.f32.xlu1 %v1375_v37  ;;  %v1445_v37 = vld [vmem:[#allocation2 + $0x198] sm:$0xff] }
 0x426   : > { %1379 = vadd.xlane.f32.xlu0 %v1378_v3  ;;  %v1446_v3 = vld [vmem:[#allocation2 + $0x1a0] sm:$0xff] }
 0x435   : > { %1486 = vrot.lane.b32.xlu1 %v3810_v36, %s3359_s22 }
 0x439   : > { %1484 = vrot.lane.b32.xlu1 %v3824_v5, %s3359_s22 }
 0x43c   : > { %1488 = vrot.lane.b32.xlu0 %v3817_v4, %s3359_s22 }
 0x43d   : > { %1480 = vrot.lane.b32.xlu1 %v3838_v6, %s3359_s22 }
 0x440   : > { %1482 = vrot.lane.b32.xlu0 %v3831_v39, %s3359_s22 }
 0x441   : > { %1476 = vrot.lane.b32.xlu1 %v3852_v8, %s3359_s22 }
 0x444   : > { %1478 = vrot.lane.b32.xlu0 %v3845_v57, %s3359_s22 }
 0x445   : > { %1472 = vrot.lane.b32.xlu1 %v3866_v9, %s3359_s22 }
 0x448   : > { %1474 = vrot.lane.b32.xlu0 %v3859_v55, %s3359_s22 }
 0x449   : > { %1468 = vrot.lane.b32.xlu1 %v3880_v10, %s3359_s22 }
 0x44c   : > { %1470 = vrot.lane.b32.xlu0 %v3873_v56, %s3359_s22 }
 0x44d   : > { %1464 = vrot.lane.b32.xlu1 %v3894_v12, %s3359_s22 }
 0x450   : > { %1466 = vrot.lane.b32.xlu0 %v3887_v43, %s3359_s22 }
 0x451   : > { %1460 = vrot.lane.b32.xlu1 %v3908_v13, %s3359_s22 }
 0x454   : > { %1462 = vrot.lane.b32.xlu0 %v3901_v54, %s3359_s22 }
 0x455   : > { %1712 = vperm.xlu1 %3208, %v3244_v48   ;;  %v1448_v48 = vld [vmem:[#allocation2 + $0x1b0] sm:$0xff] }
 0x458   : > { %1458 = vrot.lane.b32.xlu0 %v3915_v14, %s3359_s22  ;;  %s302_s22 = scalar_lea.vmem %s4128_s1, %s3664_s15  ;;  %s3290_s15 = sshll.u32 %s3364_s28, 4  ;;  %s3291_s15 = int_to_ptr.vmem [resolvable:$false] %s3290_s15 }
 0x459   : > { %1704 = vperm.xlu1 %3208, %v3246_v19   ;;  %v1450_v19 = vld [vmem:[#allocation2 + $0x1c0] sm:$0xff]  ;;  %s3292_s8 = scalar_lea.vmem %s3291_s15, 256  ;;  %p3293_p11 = scmp.lt.s32.totalorder %s2448_s19, %s3291_s15 }
 0x45c   : > { %1708 = vperm.xlu0 %3209, %v3245_v18   ;;  %v1449_v18 = vld [vmem:[#allocation2 + $0x1b8] sm:$0xff] }
 0x45d   : > { %1700 = vperm.xlu1 %3208, %v3248_v23   ;;  %v1452_v23 = vld [vmem:[#allocation2 + $0x1d0] sm:$0xff] }
 0x460   : > { %1696 = vperm.xlu0 %3209, %v3247_v22   ;;  %v1451_v22 = vld [vmem:[#allocation2 + $0x1c8] sm:$0xff] }
 0x461   : > { %1692 = vperm.xlu1 %3208, %v3249_v47   ;;  %v1453_v47 = vld [vmem:[#allocation2 + $0x1d8] sm:$0xff] }
 0x464   : > { %3211 = vset.pattern.permute.xlu0 %v3356_v1 }
 0x465   : > { %1688 = vperm.xlu1 %3208, %v3250_v49   ;;  %v1454_v49 = vld [vmem:[#allocation2 + $0x1e0] sm:$0xff] }
 0x469   : > { %1680 = vperm.xlu1 %3208, %v3251_v26   ;;  %v1455_v26 = vld [vmem:[#allocation2 + $0x1e8] sm:$0xff] }
 0x46d   : > { %1676 = vperm.xlu1 %3208, %v3252_v51   ;;  %v1456_v51 = vld [vmem:[#allocation2 + $0x1f0] sm:$0xff] }
 0x471   : > { %3210 = vset.pattern.permute.xlu1 %v3356_v1 }
 0x491   : > { %v1422_v34 = vpop.xlane.xlu1 %1421 }
 0x492   : > { %v1439_v15 = vmul.f32 0.0625, %v1422_v34  ;;  %v1457_v34 = vld [vmem:[#allocation2 + $0x1f8] sm:$0xff] }
 0x493   : > { %v1419_v16 = vpop.xlane.xlu0 %1418 }
 0x494   : > { %v1438_v17 = vmul.f32 0.0625, %v1419_v16  ;;  %2919 = vmatprep.subr.mxu1 %v1439_v15 }
 0x495   : > { %2920 = vmatpush3.msra.mxu1 %v1439_v15  ;;  %v1413_v20 = vpop.xlane.xlu1 %1412 }
 0x496   : > { %2921 = vmatprep.subr.mxu1 %v1438_v17  ;;  %v1436_v24 = vmul.f32 0.0625, %v1413_v20 }
 0x497   : > { %2922 = vmatpush3.msra.mxu1 %v1438_v17  ;;  %v1416_v7 = vpop.xlane.xlu0 %1415 }
 0x498   : > { %v1437_v21 = vmul.f32 0.0625, %v1416_v7 }
 0x499   : > { %v1407_v11 = vpop.xlane.xlu1 %1406 }
 0x49a   : > { %2923 = vmatprep.subr.mxu1 %v1437_v21  ;;  %v1434_v29 = vmul.f32 0.0625, %v1407_v11 }
 0x49b   : > { %2924 = vmatpush3.msra.mxu1 %v1437_v21  ;;  %v1410_v25 = vpop.xlane.xlu0 %1409 }
 0x49c   : > { %v1435_v27 = vmul.f32 0.0625, %v1410_v25  ;;  %2925 = vmatprep.subr.mxu1 %v1436_v24 }
 0x49d   : > { %2926 = vmatpush3.msra.mxu1 %v1436_v24  ;;  %v1401_v28 = vpop.xlane.xlu1 %1400 }
 0x49e   : > { %2927 = vmatprep.subr.mxu1 %v1435_v27  ;;  %v1432_v33 = vmul.f32 0.0625, %v1401_v28 }
 0x49f   : > { %v1404_v30 = vpop.xlane.xlu0 %1403  ;;  %2928 = vmatpush3.msra.mxu1 %v1435_v27 }
 0x4a0   : > { %v1433_v31 = vmul.f32 0.0625, %v1404_v30  ;;  %2929 = vmatprep.subr.mxu1 %v1434_v29 }
 0x4a1   : > { %2930 = vmatpush3.msra.mxu1 %v1434_v29  ;;  %v1395_v32 = vpop.xlane.xlu1 %1394 }
 0x4a2   : > { %2931 = vmatprep.subr.mxu1 %v1433_v31  ;;  %v1430_v50 = vmul.f32 0.0625, %v1395_v32 }
 0x4a3   : > { %v1398_v35 = vpop.xlane.xlu0 %1397  ;;  %2932 = vmatpush3.msra.mxu1 %v1433_v31 }
 0x4a4   : > { %v1431_v42 = vmul.f32 0.0625, %v1398_v35  ;;  %2933 = vmatprep.subr.mxu1 %v1432_v33 }
 0x4a5   : > { %2934 = vmatpush3.msra.mxu1 %v1432_v33  ;;  %v1389_v46 = vpop.xlane.xlu1 %1388 }
 0x4a6   : > { %2935 = vmatprep.subr.mxu1 %v1431_v42  ;;  %v1428_v44 = vmul.f32 0.0625, %v1389_v46 }
 0x4a7   : > { %v1392_v45 = vpop.xlane.xlu0 %1391  ;;  %2936 = vmatpush3.msra.mxu1 %v1431_v42 }
 0x4a8   : > { %v1429_v52 = vmul.f32 0.0625, %v1392_v45  ;;  %2937 = vmatprep.subr.mxu1 %v1430_v50 }
 0x4a9   : > { %2938 = vmatpush3.msra.mxu1 %v1430_v50  ;;  %v1383_v58 = vpop.xlane.xlu1 %1382 }
 0x4aa   : > { %2939 = vmatprep.subr.mxu1 %v1429_v52  ;;  %v1426_v40 = vmul.f32 0.0625, %v1383_v58 }
 0x4ab   : > { %v1386_v59 = vpop.xlane.xlu0 %1385  ;;  %2940 = vmatpush3.msra.mxu1 %v1429_v52 }
 0x4ac   : > { %v1427_v61 = vmul.f32 0.0625, %v1386_v59  ;;  %2941 = vmatprep.subr.mxu1 %v1428_v44 }
 0x4ad   : > { %2942 = vmatpush3.msra.mxu1 %v1428_v44  ;;  %v1377_v62 = vpop.xlane.xlu1 %1376 }
 0x4ae   : > { %2943 = vmatprep.subr.mxu1 %v1427_v61  ;;  %v1424_v38 = vmul.f32 0.0625, %v1377_v62 }
 0x4af   : > { %v1380_v63 = vpop.xlane.xlu0 %1379  ;;  %2944 = vmatpush3.msra.mxu1 %v1427_v61 }
 0x4b0   : > { %v1425_v0 = vmul.f32 0.0625, %v1380_v63  ;;  %2945 = vmatprep.subr.mxu1 %v1426_v40 }
 0x4b1   : > { %2946 = vmatpush3.msra.mxu1 %v1426_v40  ;;  %v1487_v15 = vpop.permute.xlu1 %1486 }
 0x4b2   : > { %2947 = vmatprep.subr.mxu1 %v1425_v0 }
 0x4b3   : > { %2948 = vmatpush3.msra.mxu1 %v1425_v0  ;;  %v1489_v16 = vpop.permute.xlu0 %1488 }
 0x4b4   : > { %2949 = vmatprep.subr.mxu1 %v1424_v38 }
 0x4b5   : > { %2950 = vmatpush3.msra.mxu1 %v1424_v38  ;;  %v1485_v17 = vpop.permute.xlu1 %1484 }
 0x4b6   : > { %2952 = vmatmul.mubr.f32.vlgmr.msra.gmra.mxu1 %v1443_v2 }
 0x4b7   : > { %2954 = vmatprep.mubr.f32.mxu1 %v1444_v60  ;;  %v1483_v20 = vpop.permute.xlu0 %1482 }
 0x4b9   : > { %v1481_v7 = vpop.permute.xlu1 %1480 }
 0x4ba   : > { %2955 = vmatmul.mubr.f32.gmra.mxu1 %v1445_v37 }
 0x4bb   : > { %2957 = vmatprep.mubr.f32.mxu1 %v1446_v3  ;;  %v1479_v24 = vpop.permute.xlu0 %1478 }
 0x4bd   : > { %v1477_v27 = vpop.permute.xlu1 %1476 }
 0x4be   : > { %2958 = vmatmul.mubr.f32.gmra.mxu1 %v1447_v41 }
 0x4bf   : > { %2960 = vmatprep.mubr.f32.mxu1 %v1448_v48  ;;  %v1475_v30 = vpop.permute.xlu0 %1474 }
 0x4c1   : > { %v1473_v32 = vpop.permute.xlu1 %1472 }
 0x4c2   : > { %2961 = vmatmul.mubr.f32.gmra.mxu1 %v1449_v18 }
 0x4c3   : > { %2963 = vmatprep.mubr.f32.mxu1 %v1450_v19  ;;  %v1471_v46 = vpop.permute.xlu0 %1470 }
 0x4c5   : > { %v1469_v0 = vpop.permute.xlu1 %1468 }
 0x4c6   : > { %2964 = vmatmul.mubr.f32.gmra.mxu1 %v1451_v22  ;;  %v3253_v22 = vld [vmem:[%s4129_s2 + $0x40] sm:$0xff] }
 0x4c7   : > { %2966 = vmatprep.mubr.f32.mxu1 %v1452_v23  ;;  %v1467_v19 = vpop.permute.xlu0 %1466  ;;  %v3254_v23 = vld [vmem:[%s4129_s2 + $0x28] sm:$0xff] }
 0x4ca   : > { %2967 = vmatmul.mubr.f32.gmra.mxu1 %v1453_v47 }
 0x4cb   : > { %2969 = vmatprep.mubr.f32.mxu1 %v1454_v49  ;;  %v1463_v47 = vpop.permute.xlu0 %1462  ;;  %v3255_v49 = vld [vmem:[%s4129_s2 + $0x20] sm:$0xff] }
 0x4ce   : > { %2970 = vmatmul.mubr.f32.gmra.mxu1 %v1455_v26  ;;  %v3256_v26 = vld [vmem:[%s4129_s2 + $0x10] sm:$0xff] }
 0x4cf   : > { %2972 = vmatprep.mubr.f32.mxu1 %v1456_v51  ;;  %v3257_v51 = vld [vmem:[%s4129_s2 + $0x18] sm:$0xff] }
 0x4d2   : > { %2973 = vmatmul.mubr.f32.gmra.mxu1 %v1457_v34 }
 0x576   : > { %v3948_v21 = vpop.f32.mrf.mxu1 }
 0x578   : > { %v3950_v11 = vpop.f32.mrf.mxu1 }
 0x57a   : > { %v3952_v25 = vpop.f32.mrf.mxu1 }
 0x57c   : > { %v1582_v28 = vpop.f32.mrf.mxu1 }
 0x57d   : > { %v1583_v34 = vadd.f32 %v1582_v28, %v1463_v47  ;;  %v3259_v28 = vld [vmem:[%s4129_s2] sm:$0xff] }
 0x57e   : > { %v2959_v29 = vpop.f32.mrf.mxu1 }
 0x57f   : > { %v1598_v2 = vadd.f32 %v2959_v29, %v1469_v0 }
 0x580   : > { %v1592_v31 = vpop.f32.mrf.mxu1 }
 0x582   : > { %v2962_v33 = vpop.f32.mrf.mxu1 }
 0x583   : > { %v1608_v35 = vadd.f32 %v2962_v33, %v1473_v32 }
 0x584   : > { %v1602_v42 = vpop.f32.mrf.mxu1 }
 0x585   : > { %1774 = vperm.xlu1 %3210, %v1608_v35   ;;  %v1603_v45 = vadd.f32 %v1602_v42, %v1471_v46 }
 0x586   : > { %v2965_v50 = vpop.f32.mrf.mxu1 }
 0x587   : > { %v1618_v59 = vadd.f32 %v2965_v50, %v1477_v27 }
 0x588   : > { %v1612_v52 = vpop.f32.mrf.mxu1 }
 0x589   : > { %v1613_v58 = vadd.f32 %v1612_v52, %v1475_v30  ;;  %1769 = vperm.xlu1 %3210, %v1603_v45   ;;  %v3360_v30 = vmov 5  }
 0x58a   : > { %v2968_v44 = vpop.f32.mrf.mxu1 }
 0x58b   : > { %1779 = vperm.xlu0 %3211, %v1613_v58   ;;  %v1628_v40 = vadd.f32 %v2968_v44, %v1481_v7 }
 0x58c   : > { %v1622_v61 = vpop.f32.mrf.mxu1 }
 0x58d   : > { %1784 = vperm.xlu1 %3210, %v1618_v59   ;;  %v1623_v63 = vadd.f32 %v1622_v61, %v1479_v24  ;;  %v3258_v24 = vld [vmem:[%s4129_s2 + $0x8] sm:$0xff] }
 0x58e   : > { %v2971_v62 = vpop.f32.mrf.mxu1 }
 0x58f   : > { %1794 = vperm.xlu0 %3211, %v1628_v40   ;;  %v1638_v37 = vadd.f32 %v2971_v62, %v1485_v17  ;;  %v4004_v62 = vld [vmem:[%s302_s22] ss:$0 sm:$0xff]  ;;  %s3286_s22 = scalar_lea.vmem %s2448_s19, 128 }
 0x590   : > { %v1632_v38 = vpop.f32.mrf.mxu1  ;;  %p3287_p8 = scmp.ne.s32.totalorder %s2448_s19, %s3286_s22  ;;  %p3294_p12 = scmp.lt.s32.totalorder %s3292_s8, %s3286_s22 }
 0x591   : > { %1789 = vperm.xlu1 %3210, %v1623_v63   ;;  %v1633_v48 = vadd.f32 %v1632_v38, %v1483_v20  ;;  %v1465_v20 = vpop.permute.xlu1 %1464 }
 0x592   : > { %v2974_v60 = vpop.f32.mrf.mxu1  ;;  %v1588_v7 = vadd.f32 %v3952_v25, %v1465_v20  ;;  %v1850_v25 = vld [vmem:[#allocation2 + $0x200] sm:$0xff]  ;;  %p3288_p9 = pnand %p3287_p8, %p3443_p5  ;;  %p3295_p13 = por %p3294_p12, %p3293_p11 }
 0x593   : > { %1764 = vperm.xlu0 %3211, %v1598_v2   ;;  %v1648_v18 = vadd.f32 %v2974_v60, %v1489_v16  ;;  %v1593_v16 = vadd.f32 %v1592_v31, %v1467_v19  ;;  %3007 = vmatprep.mubr.f32.mxu0 %v1850_v25 }
 0x594   : > { %v1642_v3 = vpop.f32.mrf.mxu1  ;;  %p3289_p10 = pneg %p3288_p9 }
 0x595   : > { %v1643_v41 = vadd.f32 %v1642_v3, %v1487_v15  ;;  %1804 = vperm.xlu1 %3210, %v1638_v37   ;;  %v1459_v15 = vpop.permute.xlu0 %1458  ;;  %v1461_v27 = vpop.permute.xlu1 %1460 }
 0x596   : > { %v1573_v17 = vadd.f32 %v3950_v11, %v1459_v15  ;;  %v1578_v11 = vadd.f32 %v3948_v21, %v1461_v27  ;;  %p3296_p0 = pnand %p3295_p13, %p3289_p10 }
 0x597   : > { %1809 = vperm.xlu0 %3211, %v1643_v41  }
 0x599   : > { %1799 = vperm.xlu1 %3210, %v1633_v48   ;;  %v1713_v29 = vpop.permute.xlu1 %1712  ;;  %v1709_v35 = vpop.permute.xlu0 %1708 }
 0x59a   : > { %v1736_v38 = vmul.f32 %v4004_v62, %v1713_v29  ;;  %v1735_v2 = vmul.f32 %v4004_v62, %v1709_v35 }
 0x59b   : > { %3213 = vset.pattern.permute.xlu0 %v3357_v53 }
 0x59c   : > { %1684 = vperm.xlu0 %3213, %v3253_v22  }
 0x59d   : > { %1814 = vperm.xlu1 %3210, %v1648_v18   ;;  %v1697_v50 = vpop.permute.xlu0 %1696 }
 0x59e   : > { %v1732_v18 = vmul.f32 %v4004_v62, %v1697_v50 }
 0x5a0   : > { %1672 = vperm.xlu0 %3213, %v3254_v23  }
 0x5a1   : > { %3212 = vset.pattern.permute.xlu1 %v3357_v53 }
 0x5a2   : > { %1668 = vperm.xlu1 %3212, %v3255_v49  }
 0x5a4   : > { %1660 = vperm.xlu0 %3213, %v3256_v26  }
 0x5a6   : > { %1664 = vperm.xlu1 %3212, %v3257_v51  }
 0x5a8   : > { %3216 = vset.pattern.permute.xlu0 %v3356_v1 }
 0x5a9   : > { %1749 = vperm.xlu0 %3216, %v1583_v34  }
 0x5aa   : > { %3214 = vset.pattern.permute.xlu1 %v3356_v1 }
 0x5ab   : > { %1759 = vperm.xlu1 %3214, %v1593_v16  }
 0x5ad   : > { %1739 = vperm.xlu0 %3216, %v1573_v17  }
 0x5af   : > { %1754 = vperm.xlu1 %3214, %v1588_v7  }
 0x5b1   : > { %3219 = vset.pattern.permute.xlu0 %v3360_v30 }
 0x5b2   : > { %1923 = vperm.xlu0 %3219, %v3810_v36  }
 0x5b3   : > { %3215 = vset.pattern.permute.xlu1 %v3357_v53  ;;  %v1705_v53 = vpop.permute.xlu1 %1704 }
 0x5b4   : > { %1656 = vperm.xlu1 %3215, %v3258_v24   ;;  %v1734_v37 = vmul.f32 %v4004_v62, %v1705_v53 }
 0x5b6   : > { %1911 = vperm.xlu0 %3219, %v3838_v6  }
 0x5b7   : > { %v1701_v31 = vpop.permute.xlu1 %1700 }
 0x5b8   : > { %1652 = vperm.xlu1 %3215, %v3259_v28   ;;  %v1733_v48 = vmul.f32 %v4004_v62, %v1701_v31 }
 0x5ba   : > { %1903 = vperm.xlu0 %3219, %v3852_v8  }
 0x5bb   : > { %v1693_v21 = vpop.permute.xlu1 %1692 }
 0x5bc   : > { %3217 = vset.pattern.permute.xlu1 %v3356_v1  ;;  %v1731_v51 = vmul.f32 %v4004_v62, %v1693_v21 }
 0x5bd   : > { %1744 = vperm.xlu1 %3217, %v1578_v11  }
 0x5be   : > { %1895 = vperm.xlu0 %3219, %v3866_v9  }
 0x5bf   : > { %v1689_v32 = vpop.permute.xlu1 %1688 }
 0x5c0   : > { %v1730_v16 = vmul.f32 %v4004_v62, %v1689_v32 }
 0x5c1   : > { %3218 = vset.pattern.permute.xlu1 %v3360_v30 }
 0x5c2   : > { %1927 = vperm.xlu1 %3218, %v3817_v4   ;;  %1887 = vperm.xlu0 %3219, %v3880_v10  }
 0x5c3   : > { %v1681_v33 = vpop.permute.xlu1 %1680 }
 0x5c4   : > { %v1728_v25 = vmul.f32 %v4004_v62, %v1681_v33 }
 0x5c6   : > { %1919 = vperm.xlu1 %3218, %v3824_v5   ;;  %1879 = vperm.xlu0 %3219, %v3894_v12  }
 0x5c7   : > { %v1677_v42 = vpop.permute.xlu1 %1676 }
 0x5c8   : > { %v1727_v31 = vmul.f32 %v4004_v62, %v1677_v42 }
 0x5ca   : > { %1915 = vperm.xlu1 %3218, %v3831_v39   ;;  %1871 = vperm.xlu0 %3219, %v3908_v13  }
 0x5ce   : > { %1907 = vperm.xlu1 %3218, %v3845_v57  }
 0x5d2   : > { %1899 = vperm.xlu1 %3218, %v3859_v55  }
 0x5d6   : > { %1891 = vperm.xlu1 %3218, %v3873_v56  }
 0x5da   : > { %1883 = vperm.xlu1 %3218, %v3887_v43  }
 0x5de   : > { %1875 = vperm.xlu1 %3218, %v3901_v54  }
 0x5e2   : > { %1867 = vperm.xlu1 %3218, %v3915_v14  }
 0x600   : > { %v1775_v46 = vpop.permute.xlu1 %1774 }
 0x601   : > { %v1824_v21 = vadd.f32 %v1775_v46, %v1728_v25  ;;  %v1862_v25 = vld [vmem:[#allocation2 + $0x260] sm:$0xff] }
 0x603   : > { %v1840_v33 = vmax.f32 %v1824_v21, 0.0  ;;  %v3361_v21 = vmov 6  }
 0x604   : > { %v1770_v45 = vpop.permute.xlu1 %1769  ;;  %3221 = vset.pattern.permute.xlu1 %v3361_v21  ;;  %3220 = vset.pattern.permute.xlu0 %v3361_v21 }
 0x605   : > { %2165 = vperm.xlu1 %3221, %v3810_v36   ;;  %2169 = vperm.xlu0 %3220, %v3817_v4  }
 0x606   : > { %v1780_v52 = vpop.permute.xlu0 %1779 }
 0x608   : > { %v1785_v58 = vpop.permute.xlu1 %1784 }
 0x609   : > { %v1826_v28 = vadd.f32 %v1785_v58, %v1730_v16  ;;  %v1823_v58 = vadd.f32 %v1770_v45, %v1727_v31  ;;  %v1853_v16 = vld [vmem:[#allocation2 + $0x218] sm:$0xff]  ;;  %v2092_v31 = vld [vmem:[#allocation2 + $0x280] sm:$0xff]  ;;  %2161 = vperm.xlu1 %3221, %v3824_v5   ;;  %2157 = vperm.xlu0 %3220, %v3831_v39  }
 0x60a   : > { %v1795_v44 = vpop.permute.xlu0 %1794  ;;  %3063 = vmatprep.mubr.f32.mxu1 %v2092_v31 }
 0x60b   : > { %v1828_v34 = vadd.f32 %v1795_v44, %v1732_v18  ;;  %v1842_v32 = vmax.f32 %v1826_v28, 0.0  ;;  %v1860_v28 = vld [vmem:[#allocation2 + $0x250] sm:$0xff] }
 0x60c   : > { %v1790_v59 = vpop.permute.xlu1 %1789 }
 0x60d   : > { %v1827_v17 = vadd.f32 %v1790_v59, %v1731_v51  ;;  %v1844_v11 = vmax.f32 %v1828_v34, 0.0  ;;  %v1851_v34 = vld [vmem:[#allocation2 + $0x208] sm:$0xff]  ;;  %2153 = vperm.xlu1 %3221, %v3838_v6   ;;  %2149 = vperm.xlu0 %3220, %v3845_v57  }
 0x60e   : > { %v1765_v61 = vpop.permute.xlu0 %1764 }
 0x60f   : > { %v1843_v29 = vmax.f32 %v1827_v17, 0.0  ;;  %v1854_v17 = vld [vmem:[#allocation2 + $0x220] sm:$0xff] }
 0x610   : > { %v1805_v40 = vpop.permute.xlu1 %1804 }
 0x611   : > { %v1830_v19 = vadd.f32 %v1805_v40, %v1734_v37  ;;  %2145 = vperm.xlu1 %3221, %v3852_v8   ;;  %2141 = vperm.xlu0 %3220, %v3859_v55  }
 0x612   : > { %v1810_v0 = vpop.permute.xlu0 %1809 }
 0x613   : > { %v1831_v3 = vadd.f32 %v1810_v0, %v1735_v2  ;;  %v1846_v15 = vmax.f32 %v1830_v19, 0.0 }
 0x614   : > { %v1800_v63 = vpop.permute.xlu1 %1799 }
 0x615   : > { %v1847_v47 = vmax.f32 %v1831_v3, 0.0  ;;  %v1829_v49 = vadd.f32 %v1800_v63, %v1733_v48  ;;  %v1839_v63 = vmax.f32 %v1823_v58, 0.0  ;;  %2137 = vperm.xlu1 %3221, %v3866_v9   ;;  %2133 = vperm.xlu0 %3220, %v3873_v56  }
 0x617   : > { %v1685_v23 = vpop.permute.xlu0 %1684  ;;  %v1845_v20 = vmax.f32 %v1829_v49, 0.0 }
 0x618   : > { %v1815_v60 = vpop.permute.xlu1 %1814  ;;  %v1729_v7 = vmul.f32 %v4004_v62, %v1685_v23 }
 0x619   : > { %v1832_v41 = vadd.f32 %v1815_v60, %v1736_v38  ;;  %2129 = vperm.xlu1 %3221, %v3880_v10   ;;  %2125 = vperm.xlu0 %3220, %v3887_v43  }
 0x61a   : > { %v1825_v53 = vadd.f32 %v1780_v52, %v1729_v7  ;;  %v1857_v7 = vld [vmem:[#allocation2 + $0x238] sm:$0xff] }
 0x61b   : > { %v1848_v22 = vmax.f32 %v1832_v41, 0.0  ;;  %v1673_v27 = vpop.permute.xlu0 %1672 }
 0x61c   : > { %v1726_v35 = vmul.f32 %v4004_v62, %v1673_v27  ;;  %v1841_v44 = vmax.f32 %v1825_v53, 0.0  ;;  %v1859_v27 = vld [vmem:[#allocation2 + $0x248] sm:$0xff]  ;;  %v1864_v53 = vld [vmem:[#allocation2 + $0x270] sm:$0xff] }
 0x61d   : > { %2975 = vmatprep.subr.mxu0 %v1848_v22  ;;  %v1669_v26 = vpop.permute.xlu1 %1668  ;;  %2121 = vperm.xlu1 %3221, %v3894_v12  }
 0x61e   : > { %2976 = vmatpush3.msra.mxu0 %v1848_v22  ;;  %v1822_v40 = vadd.f32 %v1765_v61, %v1726_v35  ;;  %v1725_v52 = vmul.f32 %v4004_v62, %v1669_v26  ;;  %2117 = vperm.xlu0 %3220, %v3901_v54  }
 0x61f   : > { %2977 = vmatprep.subr.mxu0 %v1847_v47  ;;  %v1661_v50 = vpop.permute.xlu0 %1660 }
 0x620   : > { %2978 = vmatpush3.msra.mxu0 %v1847_v47  ;;  %v1723_v42 = vmul.f32 %v4004_v62, %v1661_v50  ;;  %v1838_v45 = vmax.f32 %v1822_v40, 0.0 }
 0x621   : > { %2979 = vmatprep.subr.mxu0 %v1846_v15  ;;  %v1665_v24 = vpop.permute.xlu1 %1664  ;;  %2113 = vperm.xlu1 %3221, %v3908_v13  }
 0x622   : > { %2980 = vmatpush3.msra.mxu0 %v1846_v15  ;;  %v1724_v46 = vmul.f32 %v4004_v62, %v1665_v24  ;;  %v1852_v15 = vld [vmem:[#allocation2 + $0x210] sm:$0xff]  ;;  %v1858_v24 = vld [vmem:[#allocation2 + $0x240] sm:$0xff]  ;;  %2109 = vperm.xlu0 %3220, %v3915_v14  }
 0x623   : > { %2981 = vmatprep.subr.mxu0 %v1845_v20 }
 0x624   : > { %2982 = vmatpush3.msra.mxu0 %v1845_v20  ;;  %v1750_v38 = vpop.permute.xlu0 %1749  ;;  %v1856_v20 = vld [vmem:[#allocation2 + $0x230] sm:$0xff] }
 0x625   : > { %2983 = vmatprep.subr.mxu0 %v1844_v11  ;;  %v1819_v37 = vadd.f32 %v1750_v38, %v1723_v42  ;;  %3222 = vset.pattern.permute.xlu1 %v3356_v1 }
 0x626   : > { %2984 = vmatpush3.msra.mxu0 %v1844_v11  ;;  %v1760_v30 = vpop.permute.xlu1 %1759  ;;  %v1861_v11 = vld [vmem:[#allocation2 + $0x258] sm:$0xff]  ;;  %3223 = vset.pattern.permute.xlu0 %v3356_v1 }
 0x627   : > { %2985 = vmatprep.subr.mxu0 %v1843_v29  ;;  %v1821_v0 = vadd.f32 %v1760_v30, %v1725_v52  ;;  %v1835_v48 = vmax.f32 %v1819_v37, 0.0  ;;  %v1865_v30 = vld [vmem:[#allocation2 + $0x278] sm:$0xff] }
 0x628   : > { %2986 = vmatpush3.msra.mxu0 %v1843_v29  ;;  %v1740_v22 = vpop.permute.xlu0 %1739  ;;  %v1863_v29 = vld [vmem:[#allocation2 + $0x268] sm:$0xff] }
 0x629   : > { %2987 = vmatprep.subr.mxu0 %v1842_v32  ;;  %v1837_v61 = vmax.f32 %v1821_v0, 0.0 }
 0x62a   : > { %2988 = vmatpush3.msra.mxu0 %v1842_v32  ;;  %v1755_v59 = vpop.permute.xlu1 %1754 }
 0x62b   : > { %2989 = vmatprep.subr.mxu0 %v1841_v44  ;;  %v1820_v2 = vadd.f32 %v1755_v59, %v1724_v46 }
 0x62c   : > { %2990 = vmatpush3.msra.mxu0 %v1841_v44 }
 0x62d   : > { %2991 = vmatprep.subr.mxu0 %v1840_v33  ;;  %v1836_v3 = vmax.f32 %v1820_v2, 0.0  ;;  %v1924_v10 = vpop.permute.xlu0 %1923 }
 0x62e   : > { %2992 = vmatpush3.msra.mxu0 %v1840_v33 }
 0x62f   : > { %2993 = vmatprep.subr.mxu0 %v1839_v63  ;;  %v1657_v60 = vpop.permute.xlu1 %1656 }
 0x630   : > { %2994 = vmatpush3.msra.mxu0 %v1839_v63  ;;  %v1722_v19 = vmul.f32 %v4004_v62, %v1657_v60 }
 0x631   : > { %2995 = vmatprep.subr.mxu0 %v1838_v45  ;;  %v1912_v1 = vpop.permute.xlu0 %1911 }
 0x632   : > { %2996 = vmatpush3.msra.mxu0 %v1838_v45 }
 0x633   : > { %2997 = vmatprep.subr.mxu0 %v1837_v61  ;;  %v1653_v41 = vpop.permute.xlu1 %1652 }
 0x634   : > { %2998 = vmatpush3.msra.mxu0 %v1837_v61  ;;  %v1721_v18 = vmul.f32 %v4004_v62, %v1653_v41  ;;  %v1855_v62 = vld [vmem:[#allocation2 + $0x228] sm:$0xff] }
 0x635   : > { %2999 = vmatprep.subr.mxu0 %v1836_v3  ;;  %v1904_v58 = vpop.permute.xlu0 %1903 }
 0x636   : > { %3000 = vmatpush3.msra.mxu0 %v1836_v3  ;;  %v1817_v47 = vadd.f32 %v1740_v22, %v1721_v18 }
 0x637   : > { %3001 = vmatprep.subr.mxu0 %v1835_v48 }
 0x638   : > { %3002 = vmatpush3.msra.mxu0 %v1835_v48  ;;  %v1745_v23 = vpop.permute.xlu1 %1744  ;;  %v1833_v51 = vmax.f32 %v1817_v47, 0.0 }
 0x639   : > { %v1818_v49 = vadd.f32 %v1745_v23, %v1722_v19  ;;  %v1896_v38 = vpop.permute.xlu0 %1895 }
 0x63b   : > { %v1834_v26 = vmax.f32 %v1818_v49, 0.0 }
 0x63d   : > { %3003 = vmatprep.subr.mxu0 %v1834_v26  ;;  %v1928_v39 = vpop.permute.xlu1 %1927  ;;  %v1888_v48 = vpop.permute.xlu0 %1887 }
 0x63e   : > { %3004 = vmatpush3.msra.mxu0 %v1834_v26 }
 0x63f   : > { %3005 = vmatprep.subr.mxu0 %v1833_v51 }
 0x640   : > { %3006 = vmatpush3.msra.mxu0 %v1833_v51 }
 0x641   : > { %3008 = vmatmul.mubr.f32.vlgmr.msra.gmra.mxu0 %v1851_v34  ;;  %v1920_v55 = vpop.permute.xlu1 %1919  ;;  %v1880_v51 = vpop.permute.xlu0 %1879 }
 0x642   : > { %3010 = vmatprep.mubr.f32.mxu0 %v1852_v15 }
 0x645   : > { %3011 = vmatmul.mubr.f32.gmra.mxu0 %v1853_v16  ;;  %v1916_v12 = vpop.permute.xlu1 %1915 }
 0x646   : > { %3013 = vmatprep.mubr.f32.mxu0 %v1854_v17 }
 0x649   : > { %3014 = vmatmul.mubr.f32.gmra.mxu0 %v1855_v62  ;;  %v1908_v32 = vpop.permute.xlu1 %1907 }
 0x64a   : > { %3016 = vmatprep.mubr.f32.mxu0 %v1856_v20 }
 0x64d   : > { %3017 = vmatmul.mubr.f32.gmra.mxu0 %v1857_v7  ;;  %v1900_v33 = vpop.permute.xlu1 %1899 }
 0x64e   : > { %3019 = vmatprep.mubr.f32.mxu0 %v1858_v24  ;;  %v1872_v24 = vpop.permute.xlu0 %1871 }
 0x651   : > { %3020 = vmatmul.mubr.f32.gmra.mxu0 %v1859_v27  ;;  %v1892_v60 = vpop.permute.xlu1 %1891 }
 0x652   : > { %3022 = vmatprep.mubr.f32.mxu0 %v1860_v28 }
 0x655   : > { %3023 = vmatmul.mubr.f32.gmra.mxu0 %v1861_v11  ;;  %v1884_v22 = vpop.permute.xlu1 %1883 }
 0x656   : > { %3025 = vmatprep.mubr.f32.mxu0 %v1862_v25 }
 0x659   : > { %3026 = vmatmul.mubr.f32.gmra.mxu0 %v1863_v29  ;;  %v1876_v16 = vpop.permute.xlu1 %1875 }
 0x65a   : > { %3028 = vmatprep.mubr.f32.mxu0 %v1864_v53 }
 0x65d   : > { %3029 = vmatmul.mubr.f32.gmra.mxu0 %v1865_v30  ;;  %v1868_v11 = vpop.permute.xlu1 %1867 }
 0x701   : > { %v4040_v36 = vpop.f32.mrf.mxu0 }
 0x702   : > { %v2002_v25 = vadd.f32 %v4040_v36, %v1872_v24  ;;  %v2095_v36 = vld [vmem:[#allocation2 + $0x298] sm:$0xff] }
 0x703   : > { %v4042_v4 = vpop.f32.mrf.mxu0 }
 0x704   : > { %v1997_v53 = vadd.f32 %v4042_v4, %v1868_v11  ;;  %v2076_v31 = vmax.f32 %v2002_v25, 0.0  ;;  %v2097_v4 = vld [vmem:[#allocation2 + $0x2a8] sm:$0xff] }
 0x705   : > { %v4044_v5 = vpop.f32.mrf.mxu0 }
 0x706   : > { %v2012_v20 = vadd.f32 %v4044_v5, %v1880_v51  ;;  %v2075_v21 = vmax.f32 %v1997_v53, 0.0  ;;  %v2093_v5 = vld [vmem:[#allocation2 + $0x288] sm:$0xff] }
 0x707   : > { %v4046_v6 = vpop.f32.mrf.mxu0 }
 0x708   : > { %v2007_v27 = vadd.f32 %v4046_v6, %v1876_v16  ;;  %v2078_v29 = vmax.f32 %v2012_v20, 0.0  ;;  %v2096_v6 = vld [vmem:[#allocation2 + $0x2a0] sm:$0xff] }
 0x709   : > { %v3015_v57 = vpop.f32.mrf.mxu0 }
 0x70a   : > { %v2022_v34 = vadd.f32 %v3015_v57, %v1888_v48  ;;  %v2077_v30 = vmax.f32 %v2007_v27, 0.0  ;;  %v2098_v57 = vld [vmem:[#allocation2 + $0x2b0] sm:$0xff] }
 0x70b   : > { %v2016_v8 = vpop.f32.mrf.mxu0 }
 0x70c   : > { %v2017_v17 = vadd.f32 %v2016_v8, %v1884_v22  ;;  %v2080_v7 = vmax.f32 %v2022_v34, 0.0  ;;  %v2099_v8 = vld [vmem:[#allocation2 + $0x2b8] sm:$0xff] }
 0x70d   : > { %v3018_v9 = vpop.f32.mrf.mxu0 }
 0x70e   : > { %v2032_v23 = vadd.f32 %v3018_v9, %v1896_v38  ;;  %v2079_v28 = vmax.f32 %v2017_v17, 0.0  ;;  %v2101_v9 = vld [vmem:[#allocation2 + $0x2c8] sm:$0xff] }
 0x70f   : > { %v2026_v56 = vpop.f32.mrf.mxu0 }
 0x710   : > { %v2027_v49 = vadd.f32 %v2026_v56, %v1892_v60  ;;  %v2082_v15 = vmax.f32 %v2032_v23, 0.0  ;;  %v2102_v56 = vld [vmem:[#allocation2 + $0x2d0] sm:$0xff] }
 0x711   : > { %v3021_v43 = vpop.f32.mrf.mxu0 }
 0x712   : > { %v2042_v3 = vadd.f32 %v3021_v43, %v1904_v58  ;;  %v2081_v62 = vmax.f32 %v2027_v49, 0.0  ;;  %v2104_v43 = vld [vmem:[#allocation2 + $0x2e0] sm:$0xff] }
 0x713   : > { %v2036_v54 = vpop.f32.mrf.mxu0 }
 0x714   : > { %v2037_v18 = vadd.f32 %v2036_v54, %v1900_v33  ;;  %v2084_v47 = vmax.f32 %v2042_v3, 0.0  ;;  %v2106_v54 = vld [vmem:[#allocation2 + $0x2f0] sm:$0xff] }
 0x715   : > { %v3024_v13 = vpop.f32.mrf.mxu0 }
 0x716   : > { %v2052_v45 = vadd.f32 %v3024_v13, %v1912_v1  ;;  %v2083_v26 = vmax.f32 %v2037_v18, 0.0  ;;  %v2107_v13 = vld [vmem:[#allocation2 + $0x2f8] sm:$0xff]  ;;  %v3362_v1 = vmov 0.0  }
 0x717   : > { %v2046_v14 = vpop.f32.mrf.mxu0  ;;  %3087 = vmatprep.subr.mxu0 %v3362_v1  ;;  %3119 = vmatprep.mubr.msk.f32.mxu0 %vm3363_vm1, %v3362_v1 }
 0x718   : > { %v2047_v37 = vadd.f32 %v2046_v14, %v1908_v32  ;;  %v2086_v41 = vmax.f32 %v2052_v45, 0.0  ;;  %v2334_v14 = vld [vmem:[%s4133_s6] sm:$0xff] }
 0x719   : > { %v3027_v35 = vpop.f32.mrf.mxu0  ;;  %2337 = vperm.xlu1 %3222, %v2334_v14  }
 0x71a   : > { %v2062_v52 = vadd.f32 %v3027_v35, %v1920_v55  ;;  %v2085_v19 = vmax.f32 %v2047_v37, 0.0  ;;  %v2100_v55 = vld [vmem:[#allocation2 + $0x2c0] sm:$0xff] }
 0x71b   : > { %v2056_v50 = vpop.f32.mrf.mxu0 }
 0x71c   : > { %v2057_v46 = vadd.f32 %v2056_v50, %v1916_v12  ;;  %v2088_v2 = vmax.f32 %v2062_v52, 0.0  ;;  %v2105_v12 = vld [vmem:[#allocation2 + $0x2e8] sm:$0xff] }
 0x71d   : > { %v3030_v44 = vpop.f32.mrf.mxu0 }
 0x71e   : > { %v2072_v59 = vadd.f32 %v3030_v44, %v1928_v39  ;;  %v2087_v61 = vmax.f32 %v2057_v46, 0.0  ;;  %v2094_v39 = vld [vmem:[#allocation2 + $0x290] sm:$0xff] }
 0x71f   : > { %v2066_v40 = vpop.f32.mrf.mxu0 }
 0x720   : > { %v2090_v63 = vmax.f32 %v2072_v59, 0.0  ;;  %v2067_v42 = vadd.f32 %v2066_v40, %v1924_v10  ;;  %v2103_v10 = vld [vmem:[#allocation2 + $0x2d8] sm:$0xff]  ;;  %v2166_v59 = vpop.permute.xlu1 %2165  ;;  %v2170_v40 = vpop.permute.xlu0 %2169 }
 0x722   : > { %v2089_v0 = vmax.f32 %v2067_v42, 0.0  ;;  %3031 = vmatprep.subr.mxu1 %v2090_v63 }
 0x723   : > { %3032 = vmatpush3.msra.mxu1 %v2090_v63 }
 0x724   : > { %3033 = vmatprep.subr.mxu1 %v2089_v0  ;;  %v2162_v42 = vpop.permute.xlu1 %2161 }
 0x725   : > { %3034 = vmatpush3.msra.mxu1 %v2089_v0  ;;  %v2158_v0 = vpop.permute.xlu0 %2157 }
 0x726   : > { %3035 = vmatprep.subr.mxu1 %v2088_v2 }
 0x727   : > { %3036 = vmatpush3.msra.mxu1 %v2088_v2 }
 0x728   : > { %3037 = vmatprep.subr.mxu1 %v2087_v61  ;;  %v2154_v2 = vpop.permute.xlu1 %2153 }
 0x729   : > { %3038 = vmatpush3.msra.mxu1 %v2087_v61  ;;  %v2150_v37 = vpop.permute.xlu0 %2149 }
 0x72a   : > { %3039 = vmatprep.subr.mxu1 %v2086_v41 }
 0x72b   : > { %3040 = vmatpush3.msra.mxu1 %v2086_v41 }
 0x72c   : > { %3041 = vmatprep.subr.mxu1 %v2085_v19  ;;  %v2146_v41 = vpop.permute.xlu1 %2145 }
 0x72d   : > { %3042 = vmatpush3.msra.mxu1 %v2085_v19  ;;  %v2142_v19 = vpop.permute.xlu0 %2141 }
 0x72e   : > { %3043 = vmatprep.subr.mxu1 %v2084_v47 }
 0x72f   : > { %3044 = vmatpush3.msra.mxu1 %v2084_v47 }
 0x730   : > { %3045 = vmatprep.subr.mxu1 %v2083_v26  ;;  %v2138_v34 = vpop.permute.xlu1 %2137 }
 0x731   : > { %3046 = vmatpush3.msra.mxu1 %v2083_v26  ;;  %v2134_v17 = vpop.permute.xlu0 %2133 }
 0x732   : > { %3047 = vmatprep.subr.mxu1 %v2082_v15 }
 0x733   : > { %3048 = vmatpush3.msra.mxu1 %v2082_v15 }
 0x734   : > { %3049 = vmatprep.subr.mxu1 %v2081_v62  ;;  %v2130_v27 = vpop.permute.xlu1 %2129 }
 0x735   : > { %3050 = vmatpush3.msra.mxu1 %v2081_v62  ;;  %v2126_v25 = vpop.permute.xlu0 %2125 }
 0x736   : > { %3051 = vmatprep.subr.mxu1 %v2080_v7 }
 0x737   : > { %3052 = vmatpush3.msra.mxu1 %v2080_v7 }
 0x738   : > { %3053 = vmatprep.subr.mxu1 %v2079_v28 }
 0x739   : > { %3054 = vmatpush3.msra.mxu1 %v2079_v28 }
 0x73a   : > { %3055 = vmatprep.subr.mxu1 %v2078_v29 }
 0x73b   : > { %3056 = vmatpush3.msra.mxu1 %v2078_v29 }
 0x73c   : > { %3057 = vmatprep.subr.mxu1 %v2077_v30 }
 0x73d   : > { %3058 = vmatpush3.msra.mxu1 %v2077_v30 }
 0x73e   : > { %3059 = vmatprep.subr.mxu1 %v2076_v31 }
 0x73f   : > { %3060 = vmatpush3.msra.mxu1 %v2076_v31 }
 0x740   : > { %3061 = vmatprep.subr.mxu1 %v2075_v21 }
 0x741   : > { %3062 = vmatpush3.msra.mxu1 %v2075_v21  ;;  %v2122_v21 = vpop.permute.xlu1 %2121 }
 0x742   : > { %3064 = vmatmul.mubr.f32.vlgmr.msra.gmra.mxu1 %v2093_v5 }
 0x743   : > { %3066 = vmatprep.mubr.f32.mxu1 %v2094_v39 }
 0x746   : > { %3067 = vmatmul.mubr.f32.gmra.mxu1 %v2095_v36  ;;  %v2118_v36 = vpop.permute.xlu0 %2117 }
 0x747   : > { %3069 = vmatprep.mubr.f32.mxu1 %v2096_v6 }
 0x74a   : > { %3070 = vmatmul.mubr.f32.gmra.mxu1 %v2097_v4 }
 0x74b   : > { %3072 = vmatprep.mubr.f32.mxu1 %v2098_v57 }
 0x74e   : > { %3073 = vmatmul.mubr.f32.gmra.mxu1 %v2099_v8 }
 0x74f   : > { %3075 = vmatprep.mubr.f32.mxu1 %v2100_v55  ;;  %v2114_v55 = vpop.permute.xlu1 %2113 }
 0x752   : > { %3076 = vmatmul.mubr.f32.gmra.mxu1 %v2101_v9 }
 0x753   : > { %3078 = vmatprep.mubr.f32.mxu1 %v2102_v56 }
 0x756   : > { %3079 = vmatmul.mubr.f32.gmra.mxu1 %v2103_v10  ;;  %v2110_v10 = vpop.permute.xlu0 %2109 }
 0x757   : > { %3081 = vmatprep.mubr.f32.mxu1 %v2104_v43 }
 0x75a   : > { %3082 = vmatmul.mubr.f32.gmra.mxu1 %v2105_v12 }
 0x75b   : > { %3084 = vmatprep.mubr.f32.mxu1 %v2106_v54 }
 0x75e   : > { %3085 = vmatmul.mubr.f32.gmra.mxu1 %v2107_v13 }
 0x802   : > { %v4057_v32 = vpop.f32.mrf.mxu1 }
 0x803   : > { %v2244_v43 = vadd.f32 %v4057_v32, %v2114_v55  ;;  %v2333_v32 = vld [vmem:[%s4131_s4] sm:$0xff] }
 0x804   : > { %v4059_v35 = vpop.f32.mrf.mxu1 }
 0x805   : > { %v2239_v54 = vadd.f32 %v4059_v35, %v2110_v10  ;;  %v2318_v14 = vmax.f32 %v2244_v43, 0.0  ;;  %v2338_v35 = vpop.permute.xlu1 %2337 }
 0x806   : > { %v4061_v50 = vpop.f32.mrf.mxu1 }
 0x807   : > { %v2254_v57 = vadd.f32 %v4061_v50, %v2122_v21  ;;  %v2317_v50 = vmax.f32 %v2239_v54, 0.0 }
 0x808   : > { %v4063_v58 = vpop.f32.mrf.mxu1 }
 0x809   : > { %v2249_v9 = vadd.f32 %v4063_v58, %v2118_v36  ;;  %v2320_v12 = vmax.f32 %v2254_v57, 0.0 }
 0x80a   : > { %v3071_v44 = vpop.f32.mrf.mxu1 }
 0x80b   : > { %v2264_v5 = vadd.f32 %v3071_v44, %v2130_v27  ;;  %v2319_v13 = vmax.f32 %v2249_v9, 0.0 }
 0x80c   : > { %v2258_v33 = vpop.f32.mrf.mxu1 }
 0x80d   : > { %v2259_v6 = vadd.f32 %v2258_v33, %v2126_v25  ;;  %v2322_v8 = vmax.f32 %v2264_v5, 0.0 }
 0x80e   : > { %v3074_v52 = vpop.f32.mrf.mxu1 }
 0x80f   : > { %v2274_v29 = vadd.f32 %v3074_v52, %v2138_v34  ;;  %v2321_v56 = vmax.f32 %v2259_v6, 0.0 }
 0x810   : > { %v2268_v63 = vpop.f32.mrf.mxu1 }
 0x811   : > { %v2269_v30 = vadd.f32 %v2268_v63, %v2134_v17  ;;  %v2324_v39 = vmax.f32 %v2274_v29, 0.0 }
 0x812   : > { %v3077_v46 = vpop.f32.mrf.mxu1 }
 0x813   : > { %v2284_v7 = vadd.f32 %v3077_v46, %v2146_v41  ;;  %v2323_v4 = vmax.f32 %v2269_v30, 0.0 }
 0x814   : > { %v2278_v38 = vpop.f32.mrf.mxu1 }
 0x815   : > { %v2279_v28 = vadd.f32 %v2278_v38, %v2142_v19  ;;  %v2326_v53 = vmax.f32 %v2284_v7, 0.0 }
 0x816   : > { %v3080_v45 = vpop.f32.mrf.mxu1 }
 0x817   : > { %v2294_v15 = vadd.f32 %v3080_v45, %v2154_v2  ;;  %v2325_v31 = vmax.f32 %v2279_v28, 0.0 }
 0x818   : > { %v2288_v60 = vpop.f32.mrf.mxu1 }
 0x819   : > { %v2289_v62 = vadd.f32 %v2288_v60, %v2150_v37  ;;  %v2328_v24 = vmax.f32 %v2294_v15, 0.0 }
 0x81a   : > { %v3083_v61 = vpop.f32.mrf.mxu1 }
 0x81b   : > { %v2304_v23 = vadd.f32 %v3083_v61, %v2162_v42  ;;  %v2327_v11 = vmax.f32 %v2289_v62, 0.0 }
 0x81c   : > { %v2298_v3 = vpop.f32.mrf.mxu1 }
 0x81d   : > { %v2299_v26 = vadd.f32 %v2298_v3, %v2158_v0  ;;  %v2330_v16 = vmax.f32 %v2304_v23, 0.0 }
 0x81e   : > { %v3086_v48 = vpop.f32.mrf.mxu1 }
 0x81f   : > { %v2314_v18 = vadd.f32 %v3086_v48, %v2170_v40  ;;  %v2329_v20 = vmax.f32 %v2299_v26, 0.0 }
 0x820   : > { %v2308_v22 = vpop.f32.mrf.mxu1 }
 0x821   : > { %v2332_v47 = vmax.f32 %v2314_v18, 0.0  ;;  %v2309_v49 = vadd.f32 %v2308_v22, %v2166_v59 }
 0x823   : > { %v2331_v51 = vmax.f32 %v2309_v49, 0.0  ;;  %3088 = vmatpush3.msra.mxu0 %v2332_v47 }
 0x824   : > { %3089 = vmatprep.subr.mxu0 %v3362_v1 }
 0x825   : > { %3090 = vmatpush3.msra.mxu0 %v2331_v51 }
 0x826   : > { %3091 = vmatprep.subr.mxu0 %v3362_v1 }
 0x827   : > { %3092 = vmatpush3.msra.mxu0 %v2330_v16 }
 0x828   : > { %3093 = vmatprep.subr.mxu0 %v3362_v1 }
 0x829   : > { %3094 = vmatpush3.msra.mxu0 %v2329_v20 }
 0x82a   : > { %3095 = vmatprep.subr.mxu0 %v3362_v1 }
 0x82b   : > { %3096 = vmatpush3.msra.mxu0 %v2328_v24 }
 0x82c   : > { %3097 = vmatprep.subr.mxu0 %v3362_v1 }
 0x82d   : > { %3098 = vmatpush3.msra.mxu0 %v2327_v11 }
 0x82e   : > { %3099 = vmatprep.subr.mxu0 %v3362_v1 }
 0x82f   : > { %3100 = vmatpush3.msra.mxu0 %v2326_v53 }
 0x830   : > { %3101 = vmatprep.subr.mxu0 %v3362_v1 }
 0x831   : > { %3102 = vmatpush3.msra.mxu0 %v2325_v31 }
 0x832   : > { %3103 = vmatprep.subr.mxu0 %v3362_v1 }
 0x833   : > { %3104 = vmatpush3.msra.mxu0 %v2324_v39 }
 0x834   : > { %3105 = vmatprep.subr.mxu0 %v3362_v1 }
 0x835   : > { %3106 = vmatpush3.msra.mxu0 %v2323_v4 }
 0x836   : > { %3107 = vmatprep.subr.mxu0 %v3362_v1 }
 0x837   : > { %3108 = vmatpush3.msra.mxu0 %v2322_v8 }
 0x838   : > { %3109 = vmatprep.subr.mxu0 %v3362_v1 }
 0x839   : > { %3110 = vmatpush3.msra.mxu0 %v2321_v56 }
 0x83a   : > { %3111 = vmatprep.subr.mxu0 %v3362_v1 }
 0x83b   : > { %3112 = vmatpush3.msra.mxu0 %v2320_v12 }
 0x83c   : > { %3113 = vmatprep.subr.mxu0 %v3362_v1 }
 0x83d   : > { %3114 = vmatpush3.msra.mxu0 %v2319_v13 }
 0x83e   : > { %3115 = vmatprep.subr.mxu0 %v3362_v1 }
 0x83f   : > { %3116 = vmatpush3.msra.mxu0 %v2318_v14 }
 0x840   : > { %3117 = vmatprep.subr.mxu0 %v3362_v1  ;;  %v2410_v1 = vlaneseq }
 0x841   : > { %3118 = vmatpush3.msra.mxu0 %v2317_v50 }
 0x842   : > { %3120 = vmatmul.mubr.f32.vlgmr.msra.gmra.mxu0 %v2333_v32  ;;  %v2411_v61 = vshrl.u32 %v2410_v1, 7 }
 0x844   : > { %vm2429_vm3 = vcmp.eq.s32.totalorder %v2411_v61, 1 }
 0x902   : > { %v2406_v58 = vpop.f32.mrf.mxu0 }
 0x903   : > { %v2407_v44 = vadd.f32 %v2406_v58, %v2338_v35 }
 0x904   : > { %v3121_v59 = vpop.f32.mrf.mxu0 }
 0x905   : > { %v2413_v33 = vand.u32 2147483647, %v2407_v44  ;;  %v2412_v37 = vmax.f32 %v2407_v44, 0.0 }
 0x907   : > { %v2414_v40 = vsub.f32 0.0, %v2413_v33 }
 0x909   : > { %v2415_v52 = vmul.f32 1.442695, %v2414_v40 }
 0x90b   : > { %3224 = vpow2.f32 %v2415_v52 }
 0x918   : > { %v3225_v63 = vpop.eup %3224 }
 0x919   : > { %v2417_v42 = vadd.f32 1.0, %v3225_v63  ;;  %v2420_v46 = vmul.f32 -0.5, %v3225_v63  ;;  %v2423_v38 = vand.u32 2147483647, %v3225_v63 }
 0x91b   : > { %3226 = vlog2.f32 %v2417_v42  ;;  %v2421_v0 = vadd.f32 1.0, %v2420_v46  ;;  %vm2424_vm2 = vcmp.lt.f32.partialorder %v2423_v38, 0.0004427343 }
 0x91d   : > { %v2422_v60 = vmul.f32 %v3225_v63, %v2421_v0 }
 0x928   : > { %v3227_v45 = vpop.eup %3226 }
 0x929   : > { %v2419_v2 = vmul.f32 0.6931472, %v3227_v45 }
 0x92b   : > { %v2425_v3 = vsel %vm2424_vm2, %v2422_v60, %v2419_v2 }
 0x92c   : > { %v2426_v41 = vadd.f32 %v2425_v3, %v2412_v37 }
 0x92e   : > { %v2427_v48 = vmul.f32 0.9, %v2426_v41 }
 0x930   : > { %v2428_v18 = vadd.f32 0.1, %v2427_v48 }
 0x932   : > { %v2430_v19 = vsel %vm2429_vm3, %v2428_v18, %v2407_v44 }
 0x933   : > { %2432 = vst.msk [vmem:[%s295_s18] sm:$0xff] %vm2431_vm4, %v2430_v19 }
 0x934   : > { %3299 = shalt.err (!%p3296_p0)
}
 0x935   : > { %s3300_s9 = scalar_lea.hbm %s4092_s23, 128  ;;  %s3304_s16 = scalar_lea.hbm %s4134_s7, 256 }
 0x936   : > { %p3301_p1 = scmp.ne.s32.totalorder %s4092_s23, %s3300_s9  ;;  %p3305_p4 = scmp.lt.s32.totalorder %s4092_s23, %s4134_s7 }
 0x937   : > { %p3306_p7 = scmp.lt.s32.totalorder %s3304_s16, %s3300_s9 }
 0x938   : > { %p3302_p2 = pnand %p3301_p1, %p3443_p5 }
 0x939   : > { %p3307_p6 = por %p3306_p7, %p3305_p4 }
 0x93a   : > { %p3303_p3 = pneg %p3302_p2 }
 0x93c   : > { %p3308_p8 = pnand %p3307_p6, %p3303_p3 }
 0x93e   : > { %3311 = shalt.err (!%p3308_p8)
}
 0x93f   : > { %3126 = dma.vmem_to_hbm [thread:$0]  (%p3443_p5), %s2448_s19, 128, %s4092_s23, %s2434_s29  }
 0x940 PF: > { %p3138_p9 = scmp.ge.s32.totalorder %s3350_s27, 2  ;;  %s2459_s20 = sand.u32 1, %s3338_s24  }
 0x941   : > { %p4138_p10 = scmp.ne.s32.totalorder %s4136_s12, 0  ;;  %s2460_s21 = scalar_lea.sflag [#allocation4], %s2459_s20 }
 0x943   : > { %p3133_p11 = pnand %p3138_p9, %p4138_p10 }
 0x945   : > { %p3134_p12 = pneg %p3133_p11 }
 0x947   : > { %3333 = dma.done.wait (%p3134_p12), %s2460_s21, 128  }
 0x948   : > { %3335 = vsyncadd (%p3134_p12), %s2460_s21, 4294967168  ;;  %p18_p13 = scmp.ge.s32.totalorder %s3430_s30, 4   ;;  %s4139_s24 = smov %s3342_s25 }
 0x949   : > { %s4140_s25 = smov %s3346_s26  ;;  %s4141_s26 = smov %s3441_s10 }
 0x94a   : > { %s4142_s27 = smov %s3430_s30  ;;  %20 = sbr.rel (!%p18_p13) target bundleno = 4 (0x4), region = 96 }
 0x94f   :  { %2465 = vsyncpa [#allocation3], 1 }
 0x950   :  { %2467 = vsyncpa [#allocation3 + $0x1], 1 }
 0x951   :  { %2468 = vsyncpa [#allocation4], 1 }
 0x952   :  { %2470 = vsyncpa [#allocation4 + $0x1], 1 }

</bundles_post_ra>
